<compile_context>
chip_gen: v6e
topology: v6e:2x2x1
jax: 0.10.0
libtpu: 0.0.40
codegen_flags: <defaults>
</compile_context>

<pallas_src>
import functools
import math

import jax
import jax.numpy as jnp
from jax import lax
from jax.experimental import pallas as pl
from jax.experimental.pallas import tpu as pltpu


def _erf(x, fast_math):
    # Abramowitz & Stegun 7.1.26 rational approximation (max abs err ~1.5e-7),
    # built only from primitives guaranteed to lower in Mosaic.
    a1, a2, a3, a4, a5 = (0.254829592, -0.284496736, 1.421413741,
                          -1.453152027, 1.061405429)
    p = 0.3275911
    sgn = jnp.where(x >= 0.0, jnp.float32(1.0), jnp.float32(-1.0))
    ax = jnp.abs(x)
    d = 1.0 + p * ax
    t = pl.reciprocal(d, approx=True) if fast_math else 1.0 / d
    poly = ((((a5 * t + a4) * t + a3) * t + a2) * t + a1) * t
    return sgn * (1.0 - poly * jnp.exp(-ax * ax))


def _gelu(x, fast_math):
    return x * 0.5 * (1.0 + _erf(x * (1.0 / math.sqrt(2.0)), fast_math))


def _layer_norm(x, gamma, beta, eps, fast_math):
    # TF-style LayerNorm (biased variance, eps inside the sqrt).
    u = jnp.mean(x, axis=-1, keepdims=True)
    xc = x - u
    s = jnp.mean(xc * xc, axis=-1, keepdims=True)
    inv = lax.rsqrt(s + eps) if fast_math else 1.0 / jnp.sqrt(s + eps)
    return gamma * (xc * inv) + beta


def _trans_layer_kernel(x_ref,
                        wq_ref, bq_ref, wk_ref, bk_ref, wv_ref, bv_ref,
                        wo_ref, bo_ref, g1_ref, be1_ref,
                        wi_ref, bi_ref, wo2_ref, bo2_ref, g2_ref, be2_ref,
                        o_ref,
                        kT_ref, v_ref, ctx_ref,
                        *, num_heads, head_dim, eps, fast_math):
    f32 = jnp.float32
    cdt = kT_ref.dtype                    # matmul / cache compute dtype
    S = x_ref.shape[1]
    block_q = o_ref.shape[1]
    qt = pl.program_id(1)

    # ---- K / V for the full sequence: computed once per batch element at
    # qt == 0 and cached in VMEM scratch (persists across the q-tile axis).
    # K is stored pre-transposed so the per-head score matmul needs no
    # in-loop relayout.
    @pl.when(qt == 0)
    def _():
        xs = x_ref[0].astype(cdt)                                        # (S, H)
        k = jnp.dot(xs, wk_ref[...], preferred_element_type=f32) + bk_ref[...]
        v = jnp.dot(xs, wv_ref[...], preferred_element_type=f32) + bv_ref[...]
        kT_ref[...] = k.T.astype(cdt)                                    # (H, S)
        v_ref[...] = v.astype(cdt)                                       # (S, H)

    # ---- current q-row tile -------------------------------------------------
    row0 = pl.multiple_of(qt * block_q, block_q)
    xq = x_ref[0, pl.ds(row0, block_q), :].astype(f32)                   # (bq, H)

    scale = 1.0 / math.sqrt(head_dim)
    q = (jnp.dot(xq.astype(cdt), wq_ref[...], preferred_element_type=f32)
         + bq_ref[...]) * scale                                          # scale folded into q
    q = q.astype(cdt)

    # ---- per-head attention: head_dim-wide contractions (no masked full-H
    # matmuls); each head's context is flushed to the VMEM ctx slab so no
    # large values stay live across the unrolled head loop.
    for h in range(num_heads):
        lo = h * head_dim
        qh = q[:, lo:lo + head_dim]                                      # (bq, hd)
        kTh = kT_ref[lo:lo + head_dim, :]                                # (hd, S)
        sc = jnp.dot(qh, kTh, preferred_element_type=f32)                # (bq, S)
        sc = sc - jnp.max(sc, axis=-1, keepdims=True)
        p = jnp.exp(sc)
        den = jnp.sum(p, axis=-1, keepdims=True)
        if fast_math:
            p = p * pl.reciprocal(den, approx=True)
        else:
            p = p / den
        vh = v_ref[:, lo:lo + head_dim]                                  # (S, hd)
        ctx_h = jnp.dot(p.astype(cdt), vh, preferred_element_type=f32)   # (bq, hd)
        ctx_ref[:, lo:lo + head_dim] = ctx_h.astype(cdt)

    # ---- attention output dense + residual + LayerNorm (dropout = identity)
    attn = (jnp.dot(ctx_ref[...], wo_ref[...], preferred_element_type=f32)
            + bo_ref[...])
    h1 = _layer_norm(attn + xq, g1_ref[...], be1_ref[...], eps, fast_math)

    # ---- feed-forward: dense -> exact (erf) GELU -> dense + res + LayerNorm
    inter = (jnp.dot(h1.astype(cdt), wi_ref[...], preferred_element_type=f32)
             + bi_ref[...])
    inter = _gelu(inter, fast_math)
    out = (jnp.dot(inter.astype(cdt), wo2_ref[...], preferred_element_type=f32)
           + bo2_ref[...])
    h2 = _layer_norm(out + h1, g2_ref[...], be2_ref[...], eps, fast_math)

    o_ref[0] = h2.astype(o_ref.dtype)


def trans_layer_forward(x, params, *, num_heads, eps=1e-12,
                        compute_dtype=jnp.bfloat16, block_q=None):
    """Fused TransLayer forward.

    x:      (B, S, H) hidden states (f32).
    params: linear weights stored as (in, out) so the kernel computes
            x @ W + b (== PyTorch's x @ W_pt.T + b); biases/LN params (1, N).
    compute_dtype: dtype of the MXU operands (f32 accumulation always).
    """
    B, S, H = x.shape
    inter_size = params["wi"].shape[1]
    assert H % num_heads == 0
    head_dim = H // num_heads

    if block_q is None:
        block_q = S if (S % 128 != 0) else min(S, 256)
    assert S % block_q == 0
    n_q_tiles = S // block_q

    fast_math = (compute_dtype != jnp.float32)

    cast_w = lambda w: w.astype(compute_dtype)
    cast_b = lambda b: b.astype(jnp.float32)

    args = (x,
            cast_w(params["wq"]), cast_b(params["bq"]),
            cast_w(params["wk"]), cast_b(params["bk"]),
            cast_w(params["wv"]), cast_b(params["bv"]),
            cast_w(params["wo"]), cast_b(params["bo"]),
            cast_b(params["g1"]), cast_b(params["b1"]),
            cast_w(params["wi"]), cast_b(params["bi"]),
            cast_w(params["wo2"]), cast_b(params["bo2"]),
            cast_b(params["g2"]), cast_b(params["b2"]))

    w_itemsize = jnp.dtype(compute_dtype).itemsize
    flops = int(2 * B * S * (4 * H * H + 2 * H * inter_size) + 4 * B * S * S * H)
    transcendentals = int(B * num_heads * S * S + B * S * inter_size)
    bytes_accessed = int(
        x.dtype.itemsize * 2 * B * S * H
        + w_itemsize * (4 * H * H + 2 * H * inter_size)
        + 4 * (8 * H + 2 * inter_size))

    kernel = functools.partial(_trans_layer_kernel, num_heads=num_heads,
                               head_dim=head_dim, eps=eps, fast_math=fast_math)

    def build(single_buffer_weights):
        def wspec(shape):
            if single_buffer_weights:
                return pl.BlockSpec(shape, lambda b, t: (0, 0),
                                    pipeline_mode=pl.Buffered(1))
            return pl.BlockSpec(shape, lambda b, t: (0, 0))

        weight_specs = [
            wspec((H, H)), wspec((1, H)),                       # query
            wspec((H, H)), wspec((1, H)),                       # key
            wspec((H, H)), wspec((1, H)),                       # value
            wspec((H, H)), wspec((1, H)),                       # attention output dense
            wspec((1, H)), wspec((1, H)),                       # LayerNorm 1
            wspec((H, inter_size)), wspec((1, inter_size)),     # intermediate dense
            wspec((inter_size, H)), wspec((1, H)),              # output dense
            wspec((1, H)), wspec((1, H)),                       # LayerNorm 2
        ]

        return pl.pallas_call(
            kernel,
            out_shape=jax.ShapeDtypeStruct((B, S, H), x.dtype),
            grid_spec=pltpu.PrefetchScalarGridSpec(
                num_scalar_prefetch=0,
                grid=(B, n_q_tiles),
                in_specs=[pl.BlockSpec((1, S, H), lambda b, t: (b, 0, 0))]
                         + weight_specs,
                out_specs=pl.BlockSpec((1, block_q, H), lambda b, t: (b, t, 0)),
                scratch_shapes=[
                    pltpu.VMEM((H, S), compute_dtype),          # K^T cache
                    pltpu.VMEM((S, H), compute_dtype),          # V cache
                    pltpu.VMEM((block_q, H), compute_dtype),    # per-tile context
                ]),
            compiler_params=pltpu.CompilerParams(
                dimension_semantics=("parallel", "arbitrary"),
                vmem_limit_bytes=64 * 1024 * 1024),
            cost_estimate=pl.CostEstimate(flops=flops,
                                          transcendentals=transcendentals,
                                          bytes_accessed=bytes_accessed),
        )

    try:
        return build(True)(*args)
    except Exception:
        # Fallback if single-buffered (pipeline_mode) weight specs are not
        # supported by the installed JAX/Mosaic version.
        return build(False)(*args)


def trans_layer_reference(x, params, *, num_heads, eps=1e-12):
    """Pure-JAX reference matching the PyTorch TransLayer forward (eval mode)."""
    B, S, H = x.shape
    hd = H // num_heads

    def ln(v, g, b):
        u = v.mean(-1, keepdims=True)
        s = ((v - u) ** 2).mean(-1, keepdims=True)
        return g * ((v - u) / jnp.sqrt(s + eps)) + b

    q = x @ params["wq"] + params["bq"]
    k = x @ params["wk"] + params["bk"]
    v = x @ params["wv"] + params["bv"]

    def split(t):
        return jnp.transpose(t.reshape(B, S, num_heads, hd), (0, 2, 1, 3))

    qh, kh, vh = split(q), split(k), split(v)
    sc = jnp.einsum("bhqd,bhkd->bhqk", qh, kh) / math.sqrt(hd)
    p = jax.nn.softmax(sc, axis=-1)
    ctx = jnp.transpose(jnp.einsum("bhqk,bhkd->bhqd", p, vh),
                        (0, 2, 1, 3)).reshape(B, S, H)

    attn = ctx @ params["wo"] + params["bo"]
    h1 = ln(attn + x, params["g1"], params["b1"])

    inter = h1 @ params["wi"] + params["bi"]
    inter = inter * 0.5 * (1.0 + jax.scipy.special.erf(inter / math.sqrt(2.0)))

    out = inter @ params["wo2"] + params["bo2"]
    return ln(out + h1, params["g2"], params["b2"])


if __name__ == "__main__":
    key = jax.random.PRNGKey(0)
    B, S, H, INTER = 2, 8, 32, 64
    NUM_HEADS = 4
    EPS = 1e-12

    keys = jax.random.split(key, 14)

    def lin_init(kw, kb, fan_in, fan_out):
        # PyTorch nn.Linear default init: U(-1/sqrt(fan_in), 1/sqrt(fan_in)).
        bound = 1.0 / math.sqrt(fan_in)
        w = jax.random.uniform(kw, (fan_in, fan_out), minval=-bound,
                               maxval=bound, dtype=jnp.float32)
        b = jax.random.uniform(kb, (1, fan_out), minval=-bound,
                               maxval=bound, dtype=jnp.float32)
        return w, b

    wq, bq = lin_init(keys[0], keys[1], H, H)
    wk, bk = lin_init(keys[2], keys[3], H, H)
    wv, bv = lin_init(keys[4], keys[5], H, H)
    wo, bo = lin_init(keys[6], keys[7], H, H)
    wi, bi = lin_init(keys[8], keys[9], H, INTER)
    wo2, bo2 = lin_init(keys[10], keys[11], INTER, H)

    params = dict(
        wq=wq, bq=bq, wk=wk, bk=bk, wv=wv, bv=bv, wo=wo, bo=bo,
        g1=jnp.ones((1, H), jnp.float32), b1=jnp.zeros((1, H), jnp.float32),
        wi=wi, bi=bi, wo2=wo2, bo2=bo2,
        g2=jnp.ones((1, H), jnp.float32), b2=jnp.zeros((1, H), jnp.float32),
    )

    x = jax.random.normal(keys[12], (B, S, H), dtype=jnp.float32)

    ref = trans_layer_reference(x, params, num_heads=NUM_HEADS, eps=EPS)

    # Exact-math path (f32 MXU operands) — tight check against the reference.
    out_f32 = trans_layer_forward(x, params, num_heads=NUM_HEADS, eps=EPS,
                                  compute_dtype=jnp.float32)
    out_f32 = jax.block_until_ready(out_f32)
    assert out_f32.shape == (B, S, H)
    assert jnp.allclose(out_f32, ref, atol=1e-4, rtol=1e-4), \
        float(jnp.max(jnp.abs(out_f32 - ref)))

    # Fast path (bf16 MXU operands, f32 accumulation, EUP approx recip/rsqrt).
    out_bf16 = trans_layer_forward(x, params, num_heads=NUM_HEADS, eps=EPS,
                                   compute_dtype=jnp.bfloat16)
    out_bf16 = jax.block_until_ready(out_bf16)
    assert out_bf16.shape == (B, S, H)
    assert jnp.allclose(out_bf16, ref, atol=5e-2, rtol=5e-2), \
        float(jnp.max(jnp.abs(out_bf16 - ref)))

    print("KERNEL_OK")
</pallas_src>

<mosaic_0001>
module attributes {stable_mosaic.version = 11 : i64} {
  func.func @_trans_layer_kernel(%arg0: i32, %arg1: i32, %arg2: memref<1x8x32xf32, #tpu.memory_space<vmem>>, %arg3: memref<32x32xf32, #tpu.memory_space<vmem>>, %arg4: memref<1x32xf32, #tpu.memory_space<vmem>>, %arg5: memref<32x32xf32, #tpu.memory_space<vmem>>, %arg6: memref<1x32xf32, #tpu.memory_space<vmem>>, %arg7: memref<32x32xf32, #tpu.memory_space<vmem>>, %arg8: memref<1x32xf32, #tpu.memory_space<vmem>>, %arg9: memref<32x32xf32, #tpu.memory_space<vmem>>, %arg10: memref<1x32xf32, #tpu.memory_space<vmem>>, %arg11: memref<1x32xf32, #tpu.memory_space<vmem>>, %arg12: memref<1x32xf32, #tpu.memory_space<vmem>>, %arg13: memref<32x64xf32, #tpu.memory_space<vmem>>, %arg14: memref<1x64xf32, #tpu.memory_space<vmem>>, %arg15: memref<64x32xf32, #tpu.memory_space<vmem>>, %arg16: memref<1x32xf32, #tpu.memory_space<vmem>>, %arg17: memref<1x32xf32, #tpu.memory_space<vmem>>, %arg18: memref<1x32xf32, #tpu.memory_space<vmem>>, %arg19: memref<1x8x32xf32, #tpu.memory_space<vmem>>, %arg20: memref<32x8xf32, #tpu.memory_space<vmem>>, %arg21: memref<8x32xf32, #tpu.memory_space<vmem>>, %arg22: memref<8x32xf32, #tpu.memory_space<vmem>>) attributes {dimension_semantics = [#tpu.dimension_semantics<parallel>, #tpu.dimension_semantics<arbitrary>], iteration_bounds = array<i64: 2, 1>, scalar_prefetch = 0 : i64, scratch_operands = 3 : i64, tpu.core_type = #tpu.core_type<tc>, window_params = [{transform_indices = @transform_0, window_bounds = array<i64: 1, 8, 32>}, {pipeline_mode = #tpu.pipeline_mode<synchronous>, transform_indices = @transform_1, window_bounds = array<i64: 32, 32>}, {pipeline_mode = #tpu.pipeline_mode<synchronous>, transform_indices = @transform_2, window_bounds = array<i64: 1, 32>}, {pipeline_mode = #tpu.pipeline_mode<synchronous>, transform_indices = @transform_3, window_bounds = array<i64: 32, 32>}, {pipeline_mode = #tpu.pipeline_mode<synchronous>, transform_indices = @transform_4, window_bounds = array<i64: 1, 32>}, {pipeline_mode = #tpu.pipeline_mode<synchronous>, transform_indices = @transform_5, window_bounds = array<i64: 32, 32>}, {pipeline_mode = #tpu.pipeline_mode<synchronous>, transform_indices = @transform_6, window_bounds = array<i64: 1, 32>}, {pipeline_mode = #tpu.pipeline_mode<synchronous>, transform_indices = @transform_7, window_bounds = array<i64: 32, 32>}, {pipeline_mode = #tpu.pipeline_mode<synchronous>, transform_indices = @transform_8, window_bounds = array<i64: 1, 32>}, {pipeline_mode = #tpu.pipeline_mode<synchronous>, transform_indices = @transform_9, window_bounds = array<i64: 1, 32>}, {pipeline_mode = #tpu.pipeline_mode<synchronous>, transform_indices = @transform_10, window_bounds = array<i64: 1, 32>}, {pipeline_mode = #tpu.pipeline_mode<synchronous>, transform_indices = @transform_11, window_bounds = array<i64: 32, 64>}, {pipeline_mode = #tpu.pipeline_mode<synchronous>, transform_indices = @transform_12, window_bounds = array<i64: 1, 64>}, {pipeline_mode = #tpu.pipeline_mode<synchronous>, transform_indices = @transform_13, window_bounds = array<i64: 64, 32>}, {pipeline_mode = #tpu.pipeline_mode<synchronous>, transform_indices = @transform_14, window_bounds = array<i64: 1, 32>}, {pipeline_mode = #tpu.pipeline_mode<synchronous>, transform_indices = @transform_15, window_bounds = array<i64: 1, 32>}, {pipeline_mode = #tpu.pipeline_mode<synchronous>, transform_indices = @transform_16, window_bounds = array<i64: 1, 32>}, {transform_indices = @transform_17, window_bounds = array<i64: 1, 8, 32>}]} {
    %c0_i32 = arith.constant 0 : i32
    %0 = arith.cmpi eq, %arg1, %c0_i32 : i32
    %1 = arith.extui %0 : i1 to i32
    %c0_i32_0 = arith.constant 0 : i32
    %2 = arith.cmpi ne, %1, %c0_i32_0 : i32
    scf.if %2 {
      %c0_100 = arith.constant 0 : index
      %c0_101 = arith.constant 0 : index
      %c0_102 = arith.constant 0 : index
      %185 = vector.load %arg2[%c0_100, %c0_101, %c0_102] : memref<1x8x32xf32, #tpu.memory_space<vmem>>, vector<1x8x32xf32>
      %186 = vector.shape_cast %185 : vector<1x8x32xf32> to vector<8x32xf32>
      %c0_103 = arith.constant 0 : index
      %c0_104 = arith.constant 0 : index
      %187 = vector.load %arg5[%c0_103, %c0_104] : memref<32x32xf32, #tpu.memory_space<vmem>>, vector<32x32xf32>
      %cst_105 = arith.constant dense<0.000000e+00> : vector<8x32xf32>
      %188 = tpu.matmul %186, %187, %cst_105 {dimension_numbers = #tpu.dot_dimension_numbers<[1], [0], [0], [1], [0, 0, 1, 1], [], []>} : vector<8x32xf32>, vector<32x32xf32>, vector<8x32xf32> -> vector<8x32xf32>
      %c0_106 = arith.constant 0 : index
      %c0_107 = arith.constant 0 : index
      %189 = vector.load %arg6[%c0_106, %c0_107] : memref<1x32xf32, #tpu.memory_space<vmem>>, vector<1x32xf32>
      %190 = vector.broadcast %189 : vector<1x32xf32> to vector<8x32xf32>
      %191 = arith.addf %188, %190 : vector<8x32xf32>
      %c0_108 = arith.constant 0 : index
      %c0_109 = arith.constant 0 : index
      %192 = vector.load %arg7[%c0_108, %c0_109] : memref<32x32xf32, #tpu.memory_space<vmem>>, vector<32x32xf32>
      %cst_110 = arith.constant dense<0.000000e+00> : vector<8x32xf32>
      %193 = tpu.matmul %186, %192, %cst_110 {dimension_numbers = #tpu.dot_dimension_numbers<[1], [0], [0], [1], [0, 0, 1, 1], [], []>} : vector<8x32xf32>, vector<32x32xf32>, vector<8x32xf32> -> vector<8x32xf32>
      %c0_111 = arith.constant 0 : index
      %c0_112 = arith.constant 0 : index
      %194 = vector.load %arg8[%c0_111, %c0_112] : memref<1x32xf32, #tpu.memory_space<vmem>>, vector<1x32xf32>
      %195 = vector.broadcast %194 : vector<1x32xf32> to vector<8x32xf32>
      %196 = arith.addf %193, %195 : vector<8x32xf32>
      %197 = tpu.transpose %191, [1, 0] : vector<8x32xf32> -> vector<32x8xf32>
      %c0_113 = arith.constant 0 : index
      %c0_114 = arith.constant 0 : index
      %198 = vector.load %arg20[%c0_113, %c0_114] : memref<32x8xf32, #tpu.memory_space<vmem>>, vector<32x8xf32>
      tpu.vector_store %arg20[%c0_113, %c0_114], %197 {strides = array<i32>} : memref<32x8xf32, #tpu.memory_space<vmem>>, vector<32x8xf32>,
      %c0_115 = arith.constant 0 : index
      %c0_116 = arith.constant 0 : index
      %199 = vector.load %arg21[%c0_115, %c0_116] : memref<8x32xf32, #tpu.memory_space<vmem>>, vector<8x32xf32>
      tpu.vector_store %arg21[%c0_115, %c0_116], %196 {strides = array<i32>} : memref<8x32xf32, #tpu.memory_space<vmem>>, vector<8x32xf32>,
    } else {
    }
    %c8_i32 = arith.constant 8 : i32
    %3 = arith.muli %arg1, %c8_i32 : i32
    %4 = tpu.assume_multiple %3, 8 : i32
    %c0 = arith.constant 0 : index
    %5 = arith.index_cast %4 : i32 to index
    %c0_1 = arith.constant 0 : index
    %6 = vector.load %arg2[%c0, %5, %c0_1] : memref<1x8x32xf32, #tpu.memory_space<vmem>>, vector<1x8x32xf32>
    %7 = vector.shape_cast %6 : vector<1x8x32xf32> to vector<8x32xf32>
    %c0_2 = arith.constant 0 : index
    %c0_3 = arith.constant 0 : index
    %8 = vector.load %arg3[%c0_2, %c0_3] : memref<32x32xf32, #tpu.memory_space<vmem>>, vector<32x32xf32>
    %cst = arith.constant dense<0.000000e+00> : vector<8x32xf32>
    %9 = tpu.matmul %7, %8, %cst {dimension_numbers = #tpu.dot_dimension_numbers<[1], [0], [0], [1], [0, 0, 1, 1], [], []>} : vector<8x32xf32>, vector<32x32xf32>, vector<8x32xf32> -> vector<8x32xf32>
    %c0_4 = arith.constant 0 : index
    %c0_5 = arith.constant 0 : index
    %10 = vector.load %arg4[%c0_4, %c0_5] : memref<1x32xf32, #tpu.memory_space<vmem>>, vector<1x32xf32>
    %11 = vector.broadcast %10 : vector<1x32xf32> to vector<8x32xf32>
    %12 = arith.addf %9, %11 : vector<8x32xf32>
    %cst_6 = arith.constant 0.353553385 : f32
    %13 = vector.broadcast %cst_6 : f32 to vector<8x32xf32>
    %14 = arith.mulf %12, %13 : vector<8x32xf32>
    %15 = vector.extract_strided_slice %14 {offsets = [0, 0], sizes = [8, 8], strides = [1, 1]} : vector<8x32xf32> to vector<8x8xf32>
    %c0_7 = arith.constant 0 : index
    %c0_8 = arith.constant 0 : index
    %16 = vector.load %arg20[%c0_7, %c0_8] : memref<32x8xf32, #tpu.memory_space<vmem>>, vector<8x8xf32>
    %cst_9 = arith.constant dense<0.000000e+00> : vector<8x8xf32>
    %17 = tpu.matmul %15, %16, %cst_9 {dimension_numbers = #tpu.dot_dimension_numbers<[1], [0], [0], [1], [0, 0, 1, 1], [], []>} : vector<8x8xf32>, vector<8x8xf32>, vector<8x8xf32> -> vector<8x8xf32>
    %cst_10 = arith.constant dense<0xFF800000> : vector<8xf32>
    %18 = vector.multi_reduction <maximumf>, %17, %cst_10 [1] : vector<8x8xf32> to vector<8xf32>
    %19 = vector.shape_cast %18 : vector<8xf32> to vector<8x1xf32>
    %20 = vector.broadcast %19 : vector<8x1xf32> to vector<8x8xf32>
    %21 = arith.subf %17, %20 : vector<8x8xf32>
    %22 = math.exp %21 : vector<8x8xf32>
    %cst_11 = arith.constant dense<0.000000e+00> : vector<8xf32>
    %23 = vector.multi_reduction <add>, %22, %cst_11 [1] : vector<8x8xf32> to vector<8xf32>
    %24 = vector.shape_cast %23 : vector<8xf32> to vector<8x1xf32>
    %25 = vector.broadcast %24 : vector<8x1xf32> to vector<8x8xf32>
    %26 = arith.divf %22, %25 : vector<8x8xf32>
    %c0_12 = arith.constant 0 : index
    %c0_13 = arith.constant 0 : index
    %27 = vector.load %arg21[%c0_12, %c0_13] : memref<8x32xf32, #tpu.memory_space<vmem>>, vector<8x8xf32>
    %cst_14 = arith.constant dense<0.000000e+00> : vector<8x8xf32>
    %28 = tpu.matmul %26, %27, %cst_14 {dimension_numbers = #tpu.dot_dimension_numbers<[1], [0], [0], [1], [0, 0, 1, 1], [], []>} : vector<8x8xf32>, vector<8x8xf32>, vector<8x8xf32> -> vector<8x8xf32>
    %c0_15 = arith.constant 0 : index
    %c0_16 = arith.constant 0 : index
    %29 = vector.load %arg22[%c0_15, %c0_16] : memref<8x32xf32, #tpu.memory_space<vmem>>, vector<8x8xf32>
    tpu.vector_store %arg22[%c0_15, %c0_16], %28 {strides = array<i32>} : memref<8x32xf32, #tpu.memory_space<vmem>>, vector<8x8xf32>,
    %30 = vector.extract_strided_slice %14 {offsets = [0, 8], sizes = [8, 8], strides = [1, 1]} : vector<8x32xf32> to vector<8x8xf32>
    %c8 = arith.constant 8 : index
    %c0_17 = arith.constant 0 : index
    %31 = vector.load %arg20[%c8, %c0_17] : memref<32x8xf32, #tpu.memory_space<vmem>>, vector<8x8xf32>
    %cst_18 = arith.constant dense<0.000000e+00> : vector<8x8xf32>
    %32 = tpu.matmul %30, %31, %cst_18 {dimension_numbers = #tpu.dot_dimension_numbers<[1], [0], [0], [1], [0, 0, 1, 1], [], []>} : vector<8x8xf32>, vector<8x8xf32>, vector<8x8xf32> -> vector<8x8xf32>
    %cst_19 = arith.constant dense<0xFF800000> : vector<8xf32>
    %33 = vector.multi_reduction <maximumf>, %32, %cst_19 [1] : vector<8x8xf32> to vector<8xf32>
    %34 = vector.shape_cast %33 : vector<8xf32> to vector<8x1xf32>
    %35 = vector.broadcast %34 : vector<8x1xf32> to vector<8x8xf32>
    %36 = arith.subf %32, %35 : vector<8x8xf32>
    %37 = math.exp %36 : vector<8x8xf32>
    %cst_20 = arith.constant dense<0.000000e+00> : vector<8xf32>
    %38 = vector.multi_reduction <add>, %37, %cst_20 [1] : vector<8x8xf32> to vector<8xf32>
    %39 = vector.shape_cast %38 : vector<8xf32> to vector<8x1xf32>
    %40 = vector.broadcast %39 : vector<8x1xf32> to vector<8x8xf32>
    %41 = arith.divf %37, %40 : vector<8x8xf32>
    %c0_21 = arith.constant 0 : index
    %c8_22 = arith.constant 8 : index
    %42 = vector.load %arg21[%c0_21, %c8_22] : memref<8x32xf32, #tpu.memory_space<vmem>>, vector<8x8xf32>
    %cst_23 = arith.constant dense<0.000000e+00> : vector<8x8xf32>
    %43 = tpu.matmul %41, %42, %cst_23 {dimension_numbers = #tpu.dot_dimension_numbers<[1], [0], [0], [1], [0, 0, 1, 1], [], []>} : vector<8x8xf32>, vector<8x8xf32>, vector<8x8xf32> -> vector<8x8xf32>
    %c0_24 = arith.constant 0 : index
    %c8_25 = arith.constant 8 : index
    %44 = vector.load %arg22[%c0_24, %c8_25] : memref<8x32xf32, #tpu.memory_space<vmem>>, vector<8x8xf32>
    tpu.vector_store %arg22[%c0_24, %c8_25], %43 {strides = array<i32>} : memref<8x32xf32, #tpu.memory_space<vmem>>, vector<8x8xf32>,
    %45 = vector.extract_strided_slice %14 {offsets = [0, 16], sizes = [8, 8], strides = [1, 1]} : vector<8x32xf32> to vector<8x8xf32>
    %c16 = arith.constant 16 : index
    %c0_26 = arith.constant 0 : index
    %46 = vector.load %arg20[%c16, %c0_26] : memref<32x8xf32, #tpu.memory_space<vmem>>, vector<8x8xf32>
    %cst_27 = arith.constant dense<0.000000e+00> : vector<8x8xf32>
    %47 = tpu.matmul %45, %46, %cst_27 {dimension_numbers = #tpu.dot_dimension_numbers<[1], [0], [0], [1], [0, 0, 1, 1], [], []>} : vector<8x8xf32>, vector<8x8xf32>, vector<8x8xf32> -> vector<8x8xf32>
    %cst_28 = arith.constant dense<0xFF800000> : vector<8xf32>
    %48 = vector.multi_reduction <maximumf>, %47, %cst_28 [1] : vector<8x8xf32> to vector<8xf32>
    %49 = vector.shape_cast %48 : vector<8xf32> to vector<8x1xf32>
    %50 = vector.broadcast %49 : vector<8x1xf32> to vector<8x8xf32>
    %51 = arith.subf %47, %50 : vector<8x8xf32>
    %52 = math.exp %51 : vector<8x8xf32>
    %cst_29 = arith.constant dense<0.000000e+00> : vector<8xf32>
    %53 = vector.multi_reduction <add>, %52, %cst_29 [1] : vector<8x8xf32> to vector<8xf32>
    %54 = vector.shape_cast %53 : vector<8xf32> to vector<8x1xf32>
    %55 = vector.broadcast %54 : vector<8x1xf32> to vector<8x8xf32>
    %56 = arith.divf %52, %55 : vector<8x8xf32>
    %c0_30 = arith.constant 0 : index
    %c16_31 = arith.constant 16 : index
    %57 = vector.load %arg21[%c0_30, %c16_31] : memref<8x32xf32, #tpu.memory_space<vmem>>, vector<8x8xf32>
    %cst_32 = arith.constant dense<0.000000e+00> : vector<8x8xf32>
    %58 = tpu.matmul %56, %57, %cst_32 {dimension_numbers = #tpu.dot_dimension_numbers<[1], [0], [0], [1], [0, 0, 1, 1], [], []>} : vector<8x8xf32>, vector<8x8xf32>, vector<8x8xf32> -> vector<8x8xf32>
    %c0_33 = arith.constant 0 : index
    %c16_34 = arith.constant 16 : index
    %59 = vector.load %arg22[%c0_33, %c16_34] : memref<8x32xf32, #tpu.memory_space<vmem>>, vector<8x8xf32>
    tpu.vector_store %arg22[%c0_33, %c16_34], %58 {strides = array<i32>} : memref<8x32xf32, #tpu.memory_space<vmem>>, vector<8x8xf32>,
    %60 = vector.extract_strided_slice %14 {offsets = [0, 24], sizes = [8, 8], strides = [1, 1]} : vector<8x32xf32> to vector<8x8xf32>
    %c24 = arith.constant 24 : index
    %c0_35 = arith.constant 0 : index
    %61 = vector.load %arg20[%c24, %c0_35] : memref<32x8xf32, #tpu.memory_space<vmem>>, vector<8x8xf32>
    %cst_36 = arith.constant dense<0.000000e+00> : vector<8x8xf32>
    %62 = tpu.matmul %60, %61, %cst_36 {dimension_numbers = #tpu.dot_dimension_numbers<[1], [0], [0], [1], [0, 0, 1, 1], [], []>} : vector<8x8xf32>, vector<8x8xf32>, vector<8x8xf32> -> vector<8x8xf32>
    %cst_37 = arith.constant dense<0xFF800000> : vector<8xf32>
    %63 = vector.multi_reduction <maximumf>, %62, %cst_37 [1] : vector<8x8xf32> to vector<8xf32>
    %64 = vector.shape_cast %63 : vector<8xf32> to vector<8x1xf32>
    %65 = vector.broadcast %64 : vector<8x1xf32> to vector<8x8xf32>
    %66 = arith.subf %62, %65 : vector<8x8xf32>
    %67 = math.exp %66 : vector<8x8xf32>
    %cst_38 = arith.constant dense<0.000000e+00> : vector<8xf32>
    %68 = vector.multi_reduction <add>, %67, %cst_38 [1] : vector<8x8xf32> to vector<8xf32>
    %69 = vector.shape_cast %68 : vector<8xf32> to vector<8x1xf32>
    %70 = vector.broadcast %69 : vector<8x1xf32> to vector<8x8xf32>
    %71 = arith.divf %67, %70 : vector<8x8xf32>
    %c0_39 = arith.constant 0 : index
    %c24_40 = arith.constant 24 : index
    %72 = vector.load %arg21[%c0_39, %c24_40] : memref<8x32xf32, #tpu.memory_space<vmem>>, vector<8x8xf32>
    %cst_41 = arith.constant dense<0.000000e+00> : vector<8x8xf32>
    %73 = tpu.matmul %71, %72, %cst_41 {dimension_numbers = #tpu.dot_dimension_numbers<[1], [0], [0], [1], [0, 0, 1, 1], [], []>} : vector<8x8xf32>, vector<8x8xf32>, vector<8x8xf32> -> vector<8x8xf32>
    %c0_42 = arith.constant 0 : index
    %c24_43 = arith.constant 24 : index
    %74 = vector.load %arg22[%c0_42, %c24_43] : memref<8x32xf32, #tpu.memory_space<vmem>>, vector<8x8xf32>
    tpu.vector_store %arg22[%c0_42, %c24_43], %73 {strides = array<i32>} : memref<8x32xf32, #tpu.memory_space<vmem>>, vector<8x8xf32>,
    %c0_44 = arith.constant 0 : index
    %c0_45 = arith.constant 0 : index
    %75 = vector.load %arg22[%c0_44, %c0_45] : memref<8x32xf32, #tpu.memory_space<vmem>>, vector<8x32xf32>
    %c0_46 = arith.constant 0 : index
    %c0_47 = arith.constant 0 : index
    %76 = vector.load %arg9[%c0_46, %c0_47] : memref<32x32xf32, #tpu.memory_space<vmem>>, vector<32x32xf32>
    %cst_48 = arith.constant dense<0.000000e+00> : vector<8x32xf32>
    %77 = tpu.matmul %75, %76, %cst_48 {dimension_numbers = #tpu.dot_dimension_numbers<[1], [0], [0], [1], [0, 0, 1, 1], [], []>} : vector<8x32xf32>, vector<32x32xf32>, vector<8x32xf32> -> vector<8x32xf32>
    %c0_49 = arith.constant 0 : index
    %c0_50 = arith.constant 0 : index
    %78 = vector.load %arg10[%c0_49, %c0_50] : memref<1x32xf32, #tpu.memory_space<vmem>>, vector<1x32xf32>
    %79 = vector.broadcast %78 : vector<1x32xf32> to vector<8x32xf32>
    %80 = arith.addf %77, %79 : vector<8x32xf32>
    %81 = arith.addf %80, %7 : vector<8x32xf32>
    %c0_51 = arith.constant 0 : index
    %c0_52 = arith.constant 0 : index
    %82 = vector.load %arg11[%c0_51, %c0_52] : memref<1x32xf32, #tpu.memory_space<vmem>>, vector<1x32xf32>
    %c0_53 = arith.constant 0 : index
    %c0_54 = arith.constant 0 : index
    %83 = vector.load %arg12[%c0_53, %c0_54] : memref<1x32xf32, #tpu.memory_space<vmem>>, vector<1x32xf32>
    %cst_55 = arith.constant dense<0.000000e+00> : vector<8xf32>
    %84 = vector.multi_reduction <add>, %81, %cst_55 [1] : vector<8x32xf32> to vector<8xf32>
    %85 = vector.shape_cast %84 : vector<8xf32> to vector<8x1xf32>
    %cst_56 = arith.constant 3.200000e+01 : f32
    %86 = vector.broadcast %cst_56 : f32 to vector<8x1xf32>
    %87 = arith.divf %85, %86 : vector<8x1xf32>
    %88 = vector.broadcast %87 : vector<8x1xf32> to vector<8x32xf32>
    %89 = arith.subf %81, %88 : vector<8x32xf32>
    %90 = arith.mulf %89, %89 : vector<8x32xf32>
    %cst_57 = arith.constant dense<0.000000e+00> : vector<8xf32>
    %91 = vector.multi_reduction <add>, %90, %cst_57 [1] : vector<8x32xf32> to vector<8xf32>
    %92 = vector.shape_cast %91 : vector<8xf32> to vector<8x1xf32>
    %cst_58 = arith.constant 3.200000e+01 : f32
    %93 = vector.broadcast %cst_58 : f32 to vector<8x1xf32>
    %94 = arith.divf %92, %93 : vector<8x1xf32>
    %cst_59 = arith.constant 9.99999996E-13 : f32
    %95 = vector.broadcast %cst_59 : f32 to vector<8x1xf32>
    %96 = arith.addf %94, %95 : vector<8x1xf32>
    %97 = math.sqrt %96 : vector<8x1xf32>
    %cst_60 = arith.constant 1.000000e+00 : f32
    %98 = vector.broadcast %cst_60 : f32 to vector<8x1xf32>
    %99 = arith.divf %98, %97 : vector<8x1xf32>
    %100 = vector.broadcast %99 : vector<8x1xf32> to vector<8x32xf32>
    %101 = arith.mulf %89, %100 : vector<8x32xf32>
    %102 = vector.broadcast %82 : vector<1x32xf32> to vector<8x32xf32>
    %103 = arith.mulf %102, %101 : vector<8x32xf32>
    %104 = vector.broadcast %83 : vector<1x32xf32> to vector<8x32xf32>
    %105 = arith.addf %103, %104 : vector<8x32xf32>
    %c0_61 = arith.constant 0 : index
    %c0_62 = arith.constant 0 : index
    %106 = vector.load %arg13[%c0_61, %c0_62] : memref<32x64xf32, #tpu.memory_space<vmem>>, vector<32x64xf32>
    %cst_63 = arith.constant dense<0.000000e+00> : vector<8x64xf32>
    %107 = tpu.matmul %105, %106, %cst_63 {dimension_numbers = #tpu.dot_dimension_numbers<[1], [0], [0], [1], [0, 0, 1, 1], [], []>} : vector<8x32xf32>, vector<32x64xf32>, vector<8x64xf32> -> vector<8x64xf32>
    %c0_64 = arith.constant 0 : index
    %c0_65 = arith.constant 0 : index
    %108 = vector.load %arg14[%c0_64, %c0_65] : memref<1x64xf32, #tpu.memory_space<vmem>>, vector<1x64xf32>
    %109 = vector.broadcast %108 : vector<1x64xf32> to vector<8x64xf32>
    %110 = arith.addf %107, %109 : vector<8x64xf32>
    %cst_66 = arith.constant 5.000000e-01 : f32
    %111 = vector.broadcast %cst_66 : f32 to vector<8x64xf32>
    %112 = arith.mulf %110, %111 : vector<8x64xf32>
    %cst_67 = arith.constant 0.707106769 : f32
    %113 = vector.broadcast %cst_67 : f32 to vector<8x64xf32>
    %114 = arith.mulf %110, %113 : vector<8x64xf32>
    %cst_68 = arith.constant 0.000000e+00 : f32
    %115 = vector.broadcast %cst_68 : f32 to vector<8x64xf32>
    %116 = arith.cmpf oge, %114, %115 : vector<8x64xf32>
    %cst_69 = arith.constant 1.000000e+00 : f32
    %cst_70 = arith.constant -1.000000e+00 : f32
    %117 = vector.broadcast %cst_69 : f32 to vector<8x64xf32>
    %118 = vector.broadcast %cst_70 : f32 to vector<8x64xf32>
    %119 = arith.select %116, %117, %118 : vector<8x64xi1>, vector<8x64xf32>
    %120 = math.absf %114 : vector<8x64xf32>
    %cst_71 = arith.constant 0.327591091 : f32
    %121 = vector.broadcast %cst_71 : f32 to vector<8x64xf32>
    %122 = arith.mulf %121, %120 : vector<8x64xf32>
    %cst_72 = arith.constant 1.000000e+00 : f32
    %123 = vector.broadcast %cst_72 : f32 to vector<8x64xf32>
    %124 = arith.addf %123, %122 : vector<8x64xf32>
    %cst_73 = arith.constant 1.000000e+00 : f32
    %125 = vector.broadcast %cst_73 : f32 to vector<8x64xf32>
    %126 = arith.divf %125, %124 : vector<8x64xf32>
    %cst_74 = arith.constant 1.06140542 : f32
    %127 = vector.broadcast %cst_74 : f32 to vector<8x64xf32>
    %128 = arith.mulf %127, %126 : vector<8x64xf32>
    %cst_75 = arith.constant -1.45315206 : f32
    %129 = vector.broadcast %cst_75 : f32 to vector<8x64xf32>
    %130 = arith.addf %128, %129 : vector<8x64xf32>
    %131 = arith.mulf %130, %126 : vector<8x64xf32>
    %cst_76 = arith.constant 1.42141378 : f32
    %132 = vector.broadcast %cst_76 : f32 to vector<8x64xf32>
    %133 = arith.addf %131, %132 : vector<8x64xf32>
    %134 = arith.mulf %133, %126 : vector<8x64xf32>
    %cst_77 = arith.constant -0.284496725 : f32
    %135 = vector.broadcast %cst_77 : f32 to vector<8x64xf32>
    %136 = arith.addf %134, %135 : vector<8x64xf32>
    %137 = arith.mulf %136, %126 : vector<8x64xf32>
    %cst_78 = arith.constant 0.254829586 : f32
    %138 = vector.broadcast %cst_78 : f32 to vector<8x64xf32>
    %139 = arith.addf %137, %138 : vector<8x64xf32>
    %140 = arith.mulf %139, %126 : vector<8x64xf32>
    %cst_79 = arith.constant 0.000000e+00 : f32
    %141 = vector.broadcast %cst_79 : f32 to vector<8x64xf32>
    %142 = arith.subf %141, %120 : vector<8x64xf32>
    %143 = arith.mulf %142, %120 : vector<8x64xf32>
    %144 = math.exp %143 : vector<8x64xf32>
    %145 = arith.mulf %140, %144 : vector<8x64xf32>
    %cst_80 = arith.constant 1.000000e+00 : f32
    %146 = vector.broadcast %cst_80 : f32 to vector<8x64xf32>
    %147 = arith.subf %146, %145 : vector<8x64xf32>
    %148 = arith.mulf %119, %147 : vector<8x64xf32>
    %cst_81 = arith.constant 1.000000e+00 : f32
    %149 = vector.broadcast %cst_81 : f32 to vector<8x64xf32>
    %150 = arith.addf %149, %148 : vector<8x64xf32>
    %151 = arith.mulf %112, %150 : vector<8x64xf32>
    %c0_82 = arith.constant 0 : index
    %c0_83 = arith.constant 0 : index
    %152 = vector.load %arg15[%c0_82, %c0_83] : memref<64x32xf32, #tpu.memory_space<vmem>>, vector<64x32xf32>
    %cst_84 = arith.constant dense<0.000000e+00> : vector<8x32xf32>
    %153 = tpu.matmul %151, %152, %cst_84 {dimension_numbers = #tpu.dot_dimension_numbers<[1], [0], [0], [1], [0, 0, 1, 1], [], []>} : vector<8x64xf32>, vector<64x32xf32>, vector<8x32xf32> -> vector<8x32xf32>
    %c0_85 = arith.constant 0 : index
    %c0_86 = arith.constant 0 : index
    %154 = vector.load %arg16[%c0_85, %c0_86] : memref<1x32xf32, #tpu.memory_space<vmem>>, vector<1x32xf32>
    %155 = vector.broadcast %154 : vector<1x32xf32> to vector<8x32xf32>
    %156 = arith.addf %153, %155 : vector<8x32xf32>
    %157 = arith.addf %156, %105 : vector<8x32xf32>
    %c0_87 = arith.constant 0 : index
    %c0_88 = arith.constant 0 : index
    %158 = vector.load %arg17[%c0_87, %c0_88] : memref<1x32xf32, #tpu.memory_space<vmem>>, vector<1x32xf32>
    %c0_89 = arith.constant 0 : index
    %c0_90 = arith.constant 0 : index
    %159 = vector.load %arg18[%c0_89, %c0_90] : memref<1x32xf32, #tpu.memory_space<vmem>>, vector<1x32xf32>
    %cst_91 = arith.constant dense<0.000000e+00> : vector<8xf32>
    %160 = vector.multi_reduction <add>, %157, %cst_91 [1] : vector<8x32xf32> to vector<8xf32>
    %161 = vector.shape_cast %160 : vector<8xf32> to vector<8x1xf32>
    %cst_92 = arith.constant 3.200000e+01 : f32
    %162 = vector.broadcast %cst_92 : f32 to vector<8x1xf32>
    %163 = arith.divf %161, %162 : vector<8x1xf32>
    %164 = vector.broadcast %163 : vector<8x1xf32> to vector<8x32xf32>
    %165 = arith.subf %157, %164 : vector<8x32xf32>
    %166 = arith.mulf %165, %165 : vector<8x32xf32>
    %cst_93 = arith.constant dense<0.000000e+00> : vector<8xf32>
    %167 = vector.multi_reduction <add>, %166, %cst_93 [1] : vector<8x32xf32> to vector<8xf32>
    %168 = vector.shape_cast %167 : vector<8xf32> to vector<8x1xf32>
    %cst_94 = arith.constant 3.200000e+01 : f32
    %169 = vector.broadcast %cst_94 : f32 to vector<8x1xf32>
    %170 = arith.divf %168, %169 : vector<8x1xf32>
    %cst_95 = arith.constant 9.99999996E-13 : f32
    %171 = vector.broadcast %cst_95 : f32 to vector<8x1xf32>
    %172 = arith.addf %170, %171 : vector<8x1xf32>
    %173 = math.sqrt %172 : vector<8x1xf32>
    %cst_96 = arith.constant 1.000000e+00 : f32
    %174 = vector.broadcast %cst_96 : f32 to vector<8x1xf32>
    %175 = arith.divf %174, %173 : vector<8x1xf32>
    %176 = vector.broadcast %175 : vector<8x1xf32> to vector<8x32xf32>
    %177 = arith.mulf %165, %176 : vector<8x32xf32>
    %178 = vector.broadcast %158 : vector<1x32xf32> to vector<8x32xf32>
    %179 = arith.mulf %178, %177 : vector<8x32xf32>
    %180 = vector.broadcast %159 : vector<1x32xf32> to vector<8x32xf32>
    %181 = arith.addf %179, %180 : vector<8x32xf32>
    %c0_97 = arith.constant 0 : index
    %c0_98 = arith.constant 0 : index
    %c0_99 = arith.constant 0 : index
    %182 = vector.load %arg19[%c0_97, %c0_98, %c0_99] : memref<1x8x32xf32, #tpu.memory_space<vmem>>, vector<1x8x32xf32>
    %183 = vector.shape_cast %182 : vector<1x8x32xf32> to vector<8x32xf32>
    %184 = vector.shape_cast %181 : vector<8x32xf32> to vector<1x8x32xf32>
    tpu.vector_store %arg19[%c0_97, %c0_98, %c0_99], %184 {strides = array<i32>} : memref<1x8x32xf32, #tpu.memory_space<vmem>>, vector<1x8x32xf32>,
    return
  }
  func.func @transform_0(%arg0: i32, %arg1: i32) -> (i32, i32, i32) {
    %c0_i32 = arith.constant 0 : i32
    %c0_i32_0 = arith.constant 0 : i32
    %c0_i32_1 = arith.constant 0 : i32
    return %arg0, %c0_i32, %c0_i32_0 : i32, i32, i32
  }
  func.func @transform_1(%arg0: i32, %arg1: i32) -> (i32, i32) {
    %c0_i32 = arith.constant 0 : i32
    %c0_i32_0 = arith.constant 0 : i32
    %c0_i32_1 = arith.constant 0 : i32
    return %c0_i32, %c0_i32_0 : i32, i32
  }
  func.func @transform_2(%arg0: i32, %arg1: i32) -> (i32, i32) {
    %c0_i32 = arith.constant 0 : i32
    %c0_i32_0 = arith.constant 0 : i32
    %c0_i32_1 = arith.constant 0 : i32
    return %c0_i32, %c0_i32_0 : i32, i32
  }
  func.func @transform_3(%arg0: i32, %arg1: i32) -> (i32, i32) {
    %c0_i32 = arith.constant 0 : i32
    %c0_i32_0 = arith.constant 0 : i32
    %c0_i32_1 = arith.constant 0 : i32
    return %c0_i32, %c0_i32_0 : i32, i32
  }
  func.func @transform_4(%arg0: i32, %arg1: i32) -> (i32, i32) {
    %c0_i32 = arith.constant 0 : i32
    %c0_i32_0 = arith.constant 0 : i32
    %c0_i32_1 = arith.constant 0 : i32
    return %c0_i32, %c0_i32_0 : i32, i32
  }
  func.func @transform_5(%arg0: i32, %arg1: i32) -> (i32, i32) {
    %c0_i32 = arith.constant 0 : i32
    %c0_i32_0 = arith.constant 0 : i32
    %c0_i32_1 = arith.constant 0 : i32
    return %c0_i32, %c0_i32_0 : i32, i32
  }
  func.func @transform_6(%arg0: i32, %arg1: i32) -> (i32, i32) {
    %c0_i32 = arith.constant 0 : i32
    %c0_i32_0 = arith.constant 0 : i32
    %c0_i32_1 = arith.constant 0 : i32
    return %c0_i32, %c0_i32_0 : i32, i32
  }
  func.func @transform_7(%arg0: i32, %arg1: i32) -> (i32, i32) {
    %c0_i32 = arith.constant 0 : i32
    %c0_i32_0 = arith.constant 0 : i32
    %c0_i32_1 = arith.constant 0 : i32
    return %c0_i32, %c0_i32_0 : i32, i32
  }
  func.func @transform_8(%arg0: i32, %arg1: i32) -> (i32, i32) {
    %c0_i32 = arith.constant 0 : i32
    %c0_i32_0 = arith.constant 0 : i32
    %c0_i32_1 = arith.constant 0 : i32
    return %c0_i32, %c0_i32_0 : i32, i32
  }
  func.func @transform_9(%arg0: i32, %arg1: i32) -> (i32, i32) {
    %c0_i32 = arith.constant 0 : i32
    %c0_i32_0 = arith.constant 0 : i32
    %c0_i32_1 = arith.constant 0 : i32
    return %c0_i32, %c0_i32_0 : i32, i32
  }
  func.func @transform_10(%arg0: i32, %arg1: i32) -> (i32, i32) {
    %c0_i32 = arith.constant 0 : i32
    %c0_i32_0 = arith.constant 0 : i32
    %c0_i32_1 = arith.constant 0 : i32
    return %c0_i32, %c0_i32_0 : i32, i32
  }
  func.func @transform_11(%arg0: i32, %arg1: i32) -> (i32, i32) {
    %c0_i32 = arith.constant 0 : i32
    %c0_i32_0 = arith.constant 0 : i32
    %c0_i32_1 = arith.constant 0 : i32
    return %c0_i32, %c0_i32_0 : i32, i32
  }
  func.func @transform_12(%arg0: i32, %arg1: i32) -> (i32, i32) {
    %c0_i32 = arith.constant 0 : i32
    %c0_i32_0 = arith.constant 0 : i32
    %c0_i32_1 = arith.constant 0 : i32
    return %c0_i32, %c0_i32_0 : i32, i32
  }
  func.func @transform_13(%arg0: i32, %arg1: i32) -> (i32, i32) {
    %c0_i32 = arith.constant 0 : i32
    %c0_i32_0 = arith.constant 0 : i32
    %c0_i32_1 = arith.constant 0 : i32
    return %c0_i32, %c0_i32_0 : i32, i32
  }
  func.func @transform_14(%arg0: i32, %arg1: i32) -> (i32, i32) {
    %c0_i32 = arith.constant 0 : i32
    %c0_i32_0 = arith.constant 0 : i32
    %c0_i32_1 = arith.constant 0 : i32
    return %c0_i32, %c0_i32_0 : i32, i32
  }
  func.func @transform_15(%arg0: i32, %arg1: i32) -> (i32, i32) {
    %c0_i32 = arith.constant 0 : i32
    %c0_i32_0 = arith.constant 0 : i32
    %c0_i32_1 = arith.constant 0 : i32
    return %c0_i32, %c0_i32_0 : i32, i32
  }
  func.func @transform_16(%arg0: i32, %arg1: i32) -> (i32, i32) {
    %c0_i32 = arith.constant 0 : i32
    %c0_i32_0 = arith.constant 0 : i32
    %c0_i32_1 = arith.constant 0 : i32
    return %c0_i32, %c0_i32_0 : i32, i32
  }
  func.func @transform_17(%arg0: i32, %arg1: i32) -> (i32, i32, i32) {
    %c0_i32 = arith.constant 0 : i32
    %c0_i32_0 = arith.constant 0 : i32
    return %arg0, %arg1, %c0_i32 : i32, i32, i32
  }
}

module attributes {stable_mosaic.version = 11 : i64} {
  func.func @_trans_layer_kernel(%arg0: i32, %arg1: i32, %arg2: memref<1x8x32xf32, #tpu.memory_space<vmem>>, %arg3: memref<32x32xf32, #tpu.memory_space<vmem>>, %arg4: memref<1x32xf32, #tpu.memory_space<vmem>>, %arg5: memref<32x32xf32, #tpu.memory_space<vmem>>, %arg6: memref<1x32xf32, #tpu.memory_space<vmem>>, %arg7: memref<32x32xf32, #tpu.memory_space<vmem>>, %arg8: memref<1x32xf32, #tpu.memory_space<vmem>>, %arg9: memref<32x32xf32, #tpu.memory_space<vmem>>, %arg10: memref<1x32xf32, #tpu.memory_space<vmem>>, %arg11: memref<1x32xf32, #tpu.memory_space<vmem>>, %arg12: memref<1x32xf32, #tpu.memory_space<vmem>>, %arg13: memref<32x64xf32, #tpu.memory_space<vmem>>, %arg14: memref<1x64xf32, #tpu.memory_space<vmem>>, %arg15: memref<64x32xf32, #tpu.memory_space<vmem>>, %arg16: memref<1x32xf32, #tpu.memory_space<vmem>>, %arg17: memref<1x32xf32, #tpu.memory_space<vmem>>, %arg18: memref<1x32xf32, #tpu.memory_space<vmem>>, %arg19: memref<1x8x32xf32, #tpu.memory_space<vmem>>, %arg20: memref<32x8xf32, #tpu.memory_space<vmem>>, %arg21: memref<8x32xf32, #tpu.memory_space<vmem>>, %arg22: memref<8x32xf32, #tpu.memory_space<vmem>>) attributes {dimension_semantics = [#tpu.dimension_semantics<parallel>, #tpu.dimension_semantics<arbitrary>], iteration_bounds = array<i64: 2, 1>, scalar_prefetch = 0 : i64, scratch_operands = 3 : i64, tpu.core_type = #tpu.core_type<tc>, window_params = [{transform_indices = @transform_0, window_bounds = array<i64: 1, 8, 32>}, {pipeline_mode = #tpu.pipeline_mode<synchronous>, transform_indices = @transform_1, window_bounds = array<i64: 32, 32>}, {pipeline_mode = #tpu.pipeline_mode<synchronous>, transform_indices = @transform_2, window_bounds = array<i64: 1, 32>}, {pipeline_mode = #tpu.pipeline_mode<synchronous>, transform_indices = @transform_3, window_bounds = array<i64: 32, 32>}, {pipeline_mode = #tpu.pipeline_mode<synchronous>, transform_indices = @transform_4, window_bounds = array<i64: 1, 32>}, {pipeline_mode = #tpu.pipeline_mode<synchronous>, transform_indices = @transform_5, window_bounds = array<i64: 32, 32>}, {pipeline_mode = #tpu.pipeline_mode<synchronous>, transform_indices = @transform_6, window_bounds = array<i64: 1, 32>}, {pipeline_mode = #tpu.pipeline_mode<synchronous>, transform_indices = @transform_7, window_bounds = array<i64: 32, 32>}, {pipeline_mode = #tpu.pipeline_mode<synchronous>, transform_indices = @transform_8, window_bounds = array<i64: 1, 32>}, {pipeline_mode = #tpu.pipeline_mode<synchronous>, transform_indices = @transform_9, window_bounds = array<i64: 1, 32>}, {pipeline_mode = #tpu.pipeline_mode<synchronous>, transform_indices = @transform_10, window_bounds = array<i64: 1, 32>}, {pipeline_mode = #tpu.pipeline_mode<synchronous>, transform_indices = @transform_11, window_bounds = array<i64: 32, 64>}, {pipeline_mode = #tpu.pipeline_mode<synchronous>, transform_indices = @transform_12, window_bounds = array<i64: 1, 64>}, {pipeline_mode = #tpu.pipeline_mode<synchronous>, transform_indices = @transform_13, window_bounds = array<i64: 64, 32>}, {pipeline_mode = #tpu.pipeline_mode<synchronous>, transform_indices = @transform_14, window_bounds = array<i64: 1, 32>}, {pipeline_mode = #tpu.pipeline_mode<synchronous>, transform_indices = @transform_15, window_bounds = array<i64: 1, 32>}, {pipeline_mode = #tpu.pipeline_mode<synchronous>, transform_indices = @transform_16, window_bounds = array<i64: 1, 32>}, {transform_indices = @transform_17, window_bounds = array<i64: 1, 8, 32>}]} {
    %c0_i32 = arith.constant 0 : i32
    %0 = arith.cmpi eq, %arg1, %c0_i32 : i32
    %1 = arith.extui %0 : i1 to i32
    %c0_i32_0 = arith.constant 0 : i32
    %2 = arith.cmpi ne, %1, %c0_i32_0 : i32
    scf.if %2 {
      %c0_100 = arith.constant 0 : index
      %c0_101 = arith.constant 0 : index
      %c0_102 = arith.constant 0 : index
      %185 = vector.load %arg2[%c0_100, %c0_101, %c0_102] : memref<1x8x32xf32, #tpu.memory_space<vmem>>, vector<1x8x32xf32>
      %186 = vector.shape_cast %185 : vector<1x8x32xf32> to vector<8x32xf32>
      %c0_103 = arith.constant 0 : index
      %c0_104 = arith.constant 0 : index
      %187 = vector.load %arg5[%c0_103, %c0_104] : memref<32x32xf32, #tpu.memory_space<vmem>>, vector<32x32xf32>
      %cst_105 = arith.constant dense<0.000000e+00> : vector<8x32xf32>
      %188 = tpu.matmul %186, %187, %cst_105 {dimension_numbers = #tpu.dot_dimension_numbers<[1], [0], [0], [1], [0, 0, 1, 1], [], []>} : vector<8x32xf32>, vector<32x32xf32>, vector<8x32xf32> -> vector<8x32xf32>
      %c0_106 = arith.constant 0 : index
      %c0_107 = arith.constant 0 : index
      %189 = vector.load %arg6[%c0_106, %c0_107] : memref<1x32xf32, #tpu.memory_space<vmem>>, vector<1x32xf32>
      %190 = vector.broadcast %189 : vector<1x32xf32> to vector<8x32xf32>
      %191 = arith.addf %188, %190 : vector<8x32xf32>
      %c0_108 = arith.constant 0 : index
      %c0_109 = arith.constant 0 : index
      %192 = vector.load %arg7[%c0_108, %c0_109] : memref<32x32xf32, #tpu.memory_space<vmem>>, vector<32x32xf32>
      %cst_110 = arith.constant dense<0.000000e+00> : vector<8x32xf32>
      %193 = tpu.matmul %186, %192, %cst_110 {dimension_numbers = #tpu.dot_dimension_numbers<[1], [0], [0], [1], [0, 0, 1, 1], [], []>} : vector<8x32xf32>, vector<32x32xf32>, vector<8x32xf32> -> vector<8x32xf32>
      %c0_111 = arith.constant 0 : index
      %c0_112 = arith.constant 0 : index
      %194 = vector.load %arg8[%c0_111, %c0_112] : memref<1x32xf32, #tpu.memory_space<vmem>>, vector<1x32xf32>
      %195 = vector.broadcast %194 : vector<1x32xf32> to vector<8x32xf32>
      %196 = arith.addf %193, %195 : vector<8x32xf32>
      %197 = tpu.transpose %191, [1, 0] : vector<8x32xf32> -> vector<32x8xf32>
      %c0_113 = arith.constant 0 : index
      %c0_114 = arith.constant 0 : index
      %198 = vector.load %arg20[%c0_113, %c0_114] : memref<32x8xf32, #tpu.memory_space<vmem>>, vector<32x8xf32>
      tpu.vector_store %arg20[%c0_113, %c0_114], %197 {strides = array<i32>} : memref<32x8xf32, #tpu.memory_space<vmem>>, vector<32x8xf32>,
      %c0_115 = arith.constant 0 : index
      %c0_116 = arith.constant 0 : index
      %199 = vector.load %arg21[%c0_115, %c0_116] : memref<8x32xf32, #tpu.memory_space<vmem>>, vector<8x32xf32>
      tpu.vector_store %arg21[%c0_115, %c0_116], %196 {strides = array<i32>} : memref<8x32xf32, #tpu.memory_space<vmem>>, vector<8x32xf32>,
    } else {
    }
    %c8_i32 = arith.constant 8 : i32
    %3 = arith.muli %arg1, %c8_i32 : i32
    %4 = tpu.assume_multiple %3, 8 : i32
    %c0 = arith.constant 0 : index
    %5 = arith.index_cast %4 : i32 to index
    %c0_1 = arith.constant 0 : index
    %6 = vector.load %arg2[%c0, %5, %c0_1] : memref<1x8x32xf32, #tpu.memory_space<vmem>>, vector<1x8x32xf32>
    %7 = vector.shape_cast %6 : vector<1x8x32xf32> to vector<8x32xf32>
    %c0_2 = arith.constant 0 : index
    %c0_3 = arith.constant 0 : index
    %8 = vector.load %arg3[%c0_2, %c0_3] : memref<32x32xf32, #tpu.memory_space<vmem>>, vector<32x32xf32>
    %cst = arith.constant dense<0.000000e+00> : vector<8x32xf32>
    %9 = tpu.matmul %7, %8, %cst {dimension_numbers = #tpu.dot_dimension_numbers<[1], [0], [0], [1], [0, 0, 1, 1], [], []>} : vector<8x32xf32>, vector<32x32xf32>, vector<8x32xf32> -> vector<8x32xf32>
    %c0_4 = arith.constant 0 : index
    %c0_5 = arith.constant 0 : index
    %10 = vector.load %arg4[%c0_4, %c0_5] : memref<1x32xf32, #tpu.memory_space<vmem>>, vector<1x32xf32>
    %11 = vector.broadcast %10 : vector<1x32xf32> to vector<8x32xf32>
    %12 = arith.addf %9, %11 : vector<8x32xf32>
    %cst_6 = arith.constant 0.353553385 : f32
    %13 = vector.broadcast %cst_6 : f32 to vector<8x32xf32>
    %14 = arith.mulf %12, %13 : vector<8x32xf32>
    %15 = vector.extract_strided_slice %14 {offsets = [0, 0], sizes = [8, 8], strides = [1, 1]} : vector<8x32xf32> to vector<8x8xf32>
    %c0_7 = arith.constant 0 : index
    %c0_8 = arith.constant 0 : index
    %16 = vector.load %arg20[%c0_7, %c0_8] : memref<32x8xf32, #tpu.memory_space<vmem>>, vector<8x8xf32>
    %cst_9 = arith.constant dense<0.000000e+00> : vector<8x8xf32>
    %17 = tpu.matmul %15, %16, %cst_9 {dimension_numbers = #tpu.dot_dimension_numbers<[1], [0], [0], [1], [0, 0, 1, 1], [], []>} : vector<8x8xf32>, vector<8x8xf32>, vector<8x8xf32> -> vector<8x8xf32>
    %cst_10 = arith.constant dense<0xFF800000> : vector<8xf32>
    %18 = vector.multi_reduction <maximumf>, %17, %cst_10 [1] : vector<8x8xf32> to vector<8xf32>
    %19 = vector.shape_cast %18 : vector<8xf32> to vector<8x1xf32>
    %20 = vector.broadcast %19 : vector<8x1xf32> to vector<8x8xf32>
    %21 = arith.subf %17, %20 : vector<8x8xf32>
    %22 = math.exp %21 : vector<8x8xf32>
    %cst_11 = arith.constant dense<0.000000e+00> : vector<8xf32>
    %23 = vector.multi_reduction <add>, %22, %cst_11 [1] : vector<8x8xf32> to vector<8xf32>
    %24 = vector.shape_cast %23 : vector<8xf32> to vector<8x1xf32>
    %25 = vector.broadcast %24 : vector<8x1xf32> to vector<8x8xf32>
    %26 = arith.divf %22, %25 : vector<8x8xf32>
    %c0_12 = arith.constant 0 : index
    %c0_13 = arith.constant 0 : index
    %27 = vector.load %arg21[%c0_12, %c0_13] : memref<8x32xf32, #tpu.memory_space<vmem>>, vector<8x8xf32>
    %cst_14 = arith.constant dense<0.000000e+00> : vector<8x8xf32>
    %28 = tpu.matmul %26, %27, %cst_14 {dimension_numbers = #tpu.dot_dimension_numbers<[1], [0], [0], [1], [0, 0, 1, 1], [], []>} : vector<8x8xf32>, vector<8x8xf32>, vector<8x8xf32> -> vector<8x8xf32>
    %c0_15 = arith.constant 0 : index
    %c0_16 = arith.constant 0 : index
    %29 = vector.load %arg22[%c0_15, %c0_16] : memref<8x32xf32, #tpu.memory_space<vmem>>, vector<8x8xf32>
    tpu.vector_store %arg22[%c0_15, %c0_16], %28 {strides = array<i32>} : memref<8x32xf32, #tpu.memory_space<vmem>>, vector<8x8xf32>,
    %30 = vector.extract_strided_slice %14 {offsets = [0, 8], sizes = [8, 8], strides = [1, 1]} : vector<8x32xf32> to vector<8x8xf32>
    %c8 = arith.constant 8 : index
    %c0_17 = arith.constant 0 : index
    %31 = vector.load %arg20[%c8, %c0_17] : memref<32x8xf32, #tpu.memory_space<vmem>>, vector<8x8xf32>
    %cst_18 = arith.constant dense<0.000000e+00> : vector<8x8xf32>
    %32 = tpu.matmul %30, %31, %cst_18 {dimension_numbers = #tpu.dot_dimension_numbers<[1], [0], [0], [1], [0, 0, 1, 1], [], []>} : vector<8x8xf32>, vector<8x8xf32>, vector<8x8xf32> -> vector<8x8xf32>
    %cst_19 = arith.constant dense<0xFF800000> : vector<8xf32>
    %33 = vector.multi_reduction <maximumf>, %32, %cst_19 [1] : vector<8x8xf32> to vector<8xf32>
    %34 = vector.shape_cast %33 : vector<8xf32> to vector<8x1xf32>
    %35 = vector.broadcast %34 : vector<8x1xf32> to vector<8x8xf32>
    %36 = arith.subf %32, %35 : vector<8x8xf32>
    %37 = math.exp %36 : vector<8x8xf32>
    %cst_20 = arith.constant dense<0.000000e+00> : vector<8xf32>
    %38 = vector.multi_reduction <add>, %37, %cst_20 [1] : vector<8x8xf32> to vector<8xf32>
    %39 = vector.shape_cast %38 : vector<8xf32> to vector<8x1xf32>
    %40 = vector.broadcast %39 : vector<8x1xf32> to vector<8x8xf32>
    %41 = arith.divf %37, %40 : vector<8x8xf32>
    %c0_21 = arith.constant 0 : index
    %c8_22 = arith.constant 8 : index
    %42 = vector.load %arg21[%c0_21, %c8_22] : memref<8x32xf32, #tpu.memory_space<vmem>>, vector<8x8xf32>
    %cst_23 = arith.constant dense<0.000000e+00> : vector<8x8xf32>
    %43 = tpu.matmul %41, %42, %cst_23 {dimension_numbers = #tpu.dot_dimension_numbers<[1], [0], [0], [1], [0, 0, 1, 1], [], []>} : vector<8x8xf32>, vector<8x8xf32>, vector<8x8xf32> -> vector<8x8xf32>
    %c0_24 = arith.constant 0 : index
    %c8_25 = arith.constant 8 : index
    %44 = vector.load %arg22[%c0_24, %c8_25] : memref<8x32xf32, #tpu.memory_space<vmem>>, vector<8x8xf32>
    tpu.vector_store %arg22[%c0_24, %c8_25], %43 {strides = array<i32>} : memref<8x32xf32, #tpu.memory_space<vmem>>, vector<8x8xf32>,
    %45 = vector.extract_strided_slice %14 {offsets = [0, 16], sizes = [8, 8], strides = [1, 1]} : vector<8x32xf32> to vector<8x8xf32>
    %c16 = arith.constant 16 : index
    %c0_26 = arith.constant 0 : index
    %46 = vector.load %arg20[%c16, %c0_26] : memref<32x8xf32, #tpu.memory_space<vmem>>, vector<8x8xf32>
    %cst_27 = arith.constant dense<0.000000e+00> : vector<8x8xf32>
    %47 = tpu.matmul %45, %46, %cst_27 {dimension_numbers = #tpu.dot_dimension_numbers<[1], [0], [0], [1], [0, 0, 1, 1], [], []>} : vector<8x8xf32>, vector<8x8xf32>, vector<8x8xf32> -> vector<8x8xf32>
    %cst_28 = arith.constant dense<0xFF800000> : vector<8xf32>
    %48 = vector.multi_reduction <maximumf>, %47, %cst_28 [1] : vector<8x8xf32> to vector<8xf32>
    %49 = vector.shape_cast %48 : vector<8xf32> to vector<8x1xf32>
    %50 = vector.broadcast %49 : vector<8x1xf32> to vector<8x8xf32>
    %51 = arith.subf %47, %50 : vector<8x8xf32>
    %52 = math.exp %51 : vector<8x8xf32>
    %cst_29 = arith.constant dense<0.000000e+00> : vector<8xf32>
    %53 = vector.multi_reduction <add>, %52, %cst_29 [1] : vector<8x8xf32> to vector<8xf32>
    %54 = vector.shape_cast %53 : vector<8xf32> to vector<8x1xf32>
    %55 = vector.broadcast %54 : vector<8x1xf32> to vector<8x8xf32>
    %56 = arith.divf %52, %55 : vector<8x8xf32>
    %c0_30 = arith.constant 0 : index
    %c16_31 = arith.constant 16 : index
    %57 = vector.load %arg21[%c0_30, %c16_31] : memref<8x32xf32, #tpu.memory_space<vmem>>, vector<8x8xf32>
    %cst_32 = arith.constant dense<0.000000e+00> : vector<8x8xf32>
    %58 = tpu.matmul %56, %57, %cst_32 {dimension_numbers = #tpu.dot_dimension_numbers<[1], [0], [0], [1], [0, 0, 1, 1], [], []>} : vector<8x8xf32>, vector<8x8xf32>, vector<8x8xf32> -> vector<8x8xf32>
    %c0_33 = arith.constant 0 : index
    %c16_34 = arith.constant 16 : index
    %59 = vector.load %arg22[%c0_33, %c16_34] : memref<8x32xf32, #tpu.memory_space<vmem>>, vector<8x8xf32>
    tpu.vector_store %arg22[%c0_33, %c16_34], %58 {strides = array<i32>} : memref<8x32xf32, #tpu.memory_space<vmem>>, vector<8x8xf32>,
    %60 = vector.extract_strided_slice %14 {offsets = [0, 24], sizes = [8, 8], strides = [1, 1]} : vector<8x32xf32> to vector<8x8xf32>
    %c24 = arith.constant 24 : index
    %c0_35 = arith.constant 0 : index
    %61 = vector.load %arg20[%c24, %c0_35] : memref<32x8xf32, #tpu.memory_space<vmem>>, vector<8x8xf32>
    %cst_36 = arith.constant dense<0.000000e+00> : vector<8x8xf32>
    %62 = tpu.matmul %60, %61, %cst_36 {dimension_numbers = #tpu.dot_dimension_numbers<[1], [0], [0], [1], [0, 0, 1, 1], [], []>} : vector<8x8xf32>, vector<8x8xf32>, vector<8x8xf32> -> vector<8x8xf32>
    %cst_37 = arith.constant dense<0xFF800000> : vector<8xf32>
    %63 = vector.multi_reduction <maximumf>, %62, %cst_37 [1] : vector<8x8xf32> to vector<8xf32>
    %64 = vector.shape_cast %63 : vector<8xf32> to vector<8x1xf32>
    %65 = vector.broadcast %64 : vector<8x1xf32> to vector<8x8xf32>
    %66 = arith.subf %62, %65 : vector<8x8xf32>
    %67 = math.exp %66 : vector<8x8xf32>
    %cst_38 = arith.constant dense<0.000000e+00> : vector<8xf32>
    %68 = vector.multi_reduction <add>, %67, %cst_38 [1] : vector<8x8xf32> to vector<8xf32>
    %69 = vector.shape_cast %68 : vector<8xf32> to vector<8x1xf32>
    %70 = vector.broadcast %69 : vector<8x1xf32> to vector<8x8xf32>
    %71 = arith.divf %67, %70 : vector<8x8xf32>
    %c0_39 = arith.constant 0 : index
    %c24_40 = arith.constant 24 : index
    %72 = vector.load %arg21[%c0_39, %c24_40] : memref<8x32xf32, #tpu.memory_space<vmem>>, vector<8x8xf32>
    %cst_41 = arith.constant dense<0.000000e+00> : vector<8x8xf32>
    %73 = tpu.matmul %71, %72, %cst_41 {dimension_numbers = #tpu.dot_dimension_numbers<[1], [0], [0], [1], [0, 0, 1, 1], [], []>} : vector<8x8xf32>, vector<8x8xf32>, vector<8x8xf32> -> vector<8x8xf32>
    %c0_42 = arith.constant 0 : index
    %c24_43 = arith.constant 24 : index
    %74 = vector.load %arg22[%c0_42, %c24_43] : memref<8x32xf32, #tpu.memory_space<vmem>>, vector<8x8xf32>
    tpu.vector_store %arg22[%c0_42, %c24_43], %73 {strides = array<i32>} : memref<8x32xf32, #tpu.memory_space<vmem>>, vector<8x8xf32>,
    %c0_44 = arith.constant 0 : index
    %c0_45 = arith.constant 0 : index
    %75 = vector.load %arg22[%c0_44, %c0_45] : memref<8x32xf32, #tpu.memory_space<vmem>>, vector<8x32xf32>
    %c0_46 = arith.constant 0 : index
    %c0_47 = arith.constant 0 : index
    %76 = vector.load %arg9[%c0_46, %c0_47] : memref<32x32xf32, #tpu.memory_space<vmem>>, vector<32x32xf32>
    %cst_48 = arith.constant dense<0.000000e+00> : vector<8x32xf32>
    %77 = tpu.matmul %75, %76, %cst_48 {dimension_numbers = #tpu.dot_dimension_numbers<[1], [0], [0], [1], [0, 0, 1, 1], [], []>} : vector<8x32xf32>, vector<32x32xf32>, vector<8x32xf32> -> vector<8x32xf32>
    %c0_49 = arith.constant 0 : index
    %c0_50 = arith.constant 0 : index
    %78 = vector.load %arg10[%c0_49, %c0_50] : memref<1x32xf32, #tpu.memory_space<vmem>>, vector<1x32xf32>
    %79 = vector.broadcast %78 : vector<1x32xf32> to vector<8x32xf32>
    %80 = arith.addf %77, %79 : vector<8x32xf32>
    %81 = arith.addf %80, %7 : vector<8x32xf32>
    %c0_51 = arith.constant 0 : index
    %c0_52 = arith.constant 0 : index
    %82 = vector.load %arg11[%c0_51, %c0_52] : memref<1x32xf32, #tpu.memory_space<vmem>>, vector<1x32xf32>
    %c0_53 = arith.constant 0 : index
    %c0_54 = arith.constant 0 : index
    %83 = vector.load %arg12[%c0_53, %c0_54] : memref<1x32xf32, #tpu.memory_space<vmem>>, vector<1x32xf32>
    %cst_55 = arith.constant dense<0.000000e+00> : vector<8xf32>
    %84 = vector.multi_reduction <add>, %81, %cst_55 [1] : vector<8x32xf32> to vector<8xf32>
    %85 = vector.shape_cast %84 : vector<8xf32> to vector<8x1xf32>
    %cst_56 = arith.constant 3.200000e+01 : f32
    %86 = vector.broadcast %cst_56 : f32 to vector<8x1xf32>
    %87 = arith.divf %85, %86 : vector<8x1xf32>
    %88 = vector.broadcast %87 : vector<8x1xf32> to vector<8x32xf32>
    %89 = arith.subf %81, %88 : vector<8x32xf32>
    %90 = arith.mulf %89, %89 : vector<8x32xf32>
    %cst_57 = arith.constant dense<0.000000e+00> : vector<8xf32>
    %91 = vector.multi_reduction <add>, %90, %cst_57 [1] : vector<8x32xf32> to vector<8xf32>
    %92 = vector.shape_cast %91 : vector<8xf32> to vector<8x1xf32>
    %cst_58 = arith.constant 3.200000e+01 : f32
    %93 = vector.broadcast %cst_58 : f32 to vector<8x1xf32>
    %94 = arith.divf %92, %93 : vector<8x1xf32>
    %cst_59 = arith.constant 9.99999996E-13 : f32
    %95 = vector.broadcast %cst_59 : f32 to vector<8x1xf32>
    %96 = arith.addf %94, %95 : vector<8x1xf32>
    %97 = math.sqrt %96 : vector<8x1xf32>
    %cst_60 = arith.constant 1.000000e+00 : f32
    %98 = vector.broadcast %cst_60 : f32 to vector<8x1xf32>
    %99 = arith.divf %98, %97 : vector<8x1xf32>
    %100 = vector.broadcast %99 : vector<8x1xf32> to vector<8x32xf32>
    %101 = arith.mulf %89, %100 : vector<8x32xf32>
    %102 = vector.broadcast %82 : vector<1x32xf32> to vector<8x32xf32>
    %103 = arith.mulf %102, %101 : vector<8x32xf32>
    %104 = vector.broadcast %83 : vector<1x32xf32> to vector<8x32xf32>
    %105 = arith.addf %103, %104 : vector<8x32xf32>
    %c0_61 = arith.constant 0 : index
    %c0_62 = arith.constant 0 : index
    %106 = vector.load %arg13[%c0_61, %c0_62] : memref<32x64xf32, #tpu.memory_space<vmem>>, vector<32x64xf32>
    %cst_63 = arith.constant dense<0.000000e+00> : vector<8x64xf32>
    %107 = tpu.matmul %105, %106, %cst_63 {dimension_numbers = #tpu.dot_dimension_numbers<[1], [0], [0], [1], [0, 0, 1, 1], [], []>} : vector<8x32xf32>, vector<32x64xf32>, vector<8x64xf32> -> vector<8x64xf32>
    %c0_64 = arith.constant 0 : index
    %c0_65 = arith.constant 0 : index
    %108 = vector.load %arg14[%c0_64, %c0_65] : memref<1x64xf32, #tpu.memory_space<vmem>>, vector<1x64xf32>
    %109 = vector.broadcast %108 : vector<1x64xf32> to vector<8x64xf32>
    %110 = arith.addf %107, %109 : vector<8x64xf32>
    %cst_66 = arith.constant 5.000000e-01 : f32
    %111 = vector.broadcast %cst_66 : f32 to vector<8x64xf32>
    %112 = arith.mulf %110, %111 : vector<8x64xf32>
    %cst_67 = arith.constant 0.707106769 : f32
    %113 = vector.broadcast %cst_67 : f32 to vector<8x64xf32>
    %114 = arith.mulf %110, %113 : vector<8x64xf32>
    %cst_68 = arith.constant 0.000000e+00 : f32
    %115 = vector.broadcast %cst_68 : f32 to vector<8x64xf32>
    %116 = arith.cmpf oge, %114, %115 : vector<8x64xf32>
    %cst_69 = arith.constant 1.000000e+00 : f32
    %cst_70 = arith.constant -1.000000e+00 : f32
    %117 = vector.broadcast %cst_69 : f32 to vector<8x64xf32>
    %118 = vector.broadcast %cst_70 : f32 to vector<8x64xf32>
    %119 = arith.select %116, %117, %118 : vector<8x64xi1>, vector<8x64xf32>
    %120 = math.absf %114 : vector<8x64xf32>
    %cst_71 = arith.constant 0.327591091 : f32
    %121 = vector.broadcast %cst_71 : f32 to vector<8x64xf32>
    %122 = arith.mulf %121, %120 : vector<8x64xf32>
    %cst_72 = arith.constant 1.000000e+00 : f32
    %123 = vector.broadcast %cst_72 : f32 to vector<8x64xf32>
    %124 = arith.addf %123, %122 : vector<8x64xf32>
    %cst_73 = arith.constant 1.000000e+00 : f32
    %125 = vector.broadcast %cst_73 : f32 to vector<8x64xf32>
    %126 = arith.divf %125, %124 : vector<8x64xf32>
    %cst_74 = arith.constant 1.06140542 : f32
    %127 = vector.broadcast %cst_74 : f32 to vector<8x64xf32>
    %128 = arith.mulf %127, %126 : vector<8x64xf32>
    %cst_75 = arith.constant -1.45315206 : f32
    %129 = vector.broadcast %cst_75 : f32 to vector<8x64xf32>
    %130 = arith.addf %128, %129 : vector<8x64xf32>
    %131 = arith.mulf %130, %126 : vector<8x64xf32>
    %cst_76 = arith.constant 1.42141378 : f32
    %132 = vector.broadcast %cst_76 : f32 to vector<8x64xf32>
    %133 = arith.addf %131, %132 : vector<8x64xf32>
    %134 = arith.mulf %133, %126 : vector<8x64xf32>
    %cst_77 = arith.constant -0.284496725 : f32
    %135 = vector.broadcast %cst_77 : f32 to vector<8x64xf32>
    %136 = arith.addf %134, %135 : vector<8x64xf32>
    %137 = arith.mulf %136, %126 : vector<8x64xf32>
    %cst_78 = arith.constant 0.254829586 : f32
    %138 = vector.broadcast %cst_78 : f32 to vector<8x64xf32>
    %139 = arith.addf %137, %138 : vector<8x64xf32>
    %140 = arith.mulf %139, %126 : vector<8x64xf32>
    %cst_79 = arith.constant 0.000000e+00 : f32
    %141 = vector.broadcast %cst_79 : f32 to vector<8x64xf32>
    %142 = arith.subf %141, %120 : vector<8x64xf32>
    %143 = arith.mulf %142, %120 : vector<8x64xf32>
    %144 = math.exp %143 : vector<8x64xf32>
    %145 = arith.mulf %140, %144 : vector<8x64xf32>
    %cst_80 = arith.constant 1.000000e+00 : f32
    %146 = vector.broadcast %cst_80 : f32 to vector<8x64xf32>
    %147 = arith.subf %146, %145 : vector<8x64xf32>
    %148 = arith.mulf %119, %147 : vector<8x64xf32>
    %cst_81 = arith.constant 1.000000e+00 : f32
    %149 = vector.broadcast %cst_81 : f32 to vector<8x64xf32>
    %150 = arith.addf %149, %148 : vector<8x64xf32>
    %151 = arith.mulf %112, %150 : vector<8x64xf32>
    %c0_82 = arith.constant 0 : index
    %c0_83 = arith.constant 0 : index
    %152 = vector.load %arg15[%c0_82, %c0_83] : memref<64x32xf32, #tpu.memory_space<vmem>>, vector<64x32xf32>
    %cst_84 = arith.constant dense<0.000000e+00> : vector<8x32xf32>
    %153 = tpu.matmul %151, %152, %cst_84 {dimension_numbers = #tpu.dot_dimension_numbers<[1], [0], [0], [1], [0, 0, 1, 1], [], []>} : vector<8x64xf32>, vector<64x32xf32>, vector<8x32xf32> -> vector<8x32xf32>
    %c0_85 = arith.constant 0 : index
    %c0_86 = arith.constant 0 : index
    %154 = vector.load %arg16[%c0_85, %c0_86] : memref<1x32xf32, #tpu.memory_space<vmem>>, vector<1x32xf32>
    %155 = vector.broadcast %154 : vector<1x32xf32> to vector<8x32xf32>
    %156 = arith.addf %153, %155 : vector<8x32xf32>
    %157 = arith.addf %156, %105 : vector<8x32xf32>
    %c0_87 = arith.constant 0 : index
    %c0_88 = arith.constant 0 : index
    %158 = vector.load %arg17[%c0_87, %c0_88] : memref<1x32xf32, #tpu.memory_space<vmem>>, vector<1x32xf32>
    %c0_89 = arith.constant 0 : index
    %c0_90 = arith.constant 0 : index
    %159 = vector.load %arg18[%c0_89, %c0_90] : memref<1x32xf32, #tpu.memory_space<vmem>>, vector<1x32xf32>
    %cst_91 = arith.constant dense<0.000000e+00> : vector<8xf32>
    %160 = vector.multi_reduction <add>, %157, %cst_91 [1] : vector<8x32xf32> to vector<8xf32>
    %161 = vector.shape_cast %160 : vector<8xf32> to vector<8x1xf32>
    %cst_92 = arith.constant 3.200000e+01 : f32
    %162 = vector.broadcast %cst_92 : f32 to vector<8x1xf32>
    %163 = arith.divf %161, %162 : vector<8x1xf32>
    %164 = vector.broadcast %163 : vector<8x1xf32> to vector<8x32xf32>
    %165 = arith.subf %157, %164 : vector<8x32xf32>
    %166 = arith.mulf %165, %165 : vector<8x32xf32>
    %cst_93 = arith.constant dense<0.000000e+00> : vector<8xf32>
    %167 = vector.multi_reduction <add>, %166, %cst_93 [1] : vector<8x32xf32> to vector<8xf32>
    %168 = vector.shape_cast %167 : vector<8xf32> to vector<8x1xf32>
    %cst_94 = arith.constant 3.200000e+01 : f32
    %169 = vector.broadcast %cst_94 : f32 to vector<8x1xf32>
    %170 = arith.divf %168, %169 : vector<8x1xf32>
    %cst_95 = arith.constant 9.99999996E-13 : f32
    %171 = vector.broadcast %cst_95 : f32 to vector<8x1xf32>
    %172 = arith.addf %170, %171 : vector<8x1xf32>
    %173 = math.sqrt %172 : vector<8x1xf32>
    %cst_96 = arith.constant 1.000000e+00 : f32
    %174 = vector.broadcast %cst_96 : f32 to vector<8x1xf32>
    %175 = arith.divf %174, %173 : vector<8x1xf32>
    %176 = vector.broadcast %175 : vector<8x1xf32> to vector<8x32xf32>
    %177 = arith.mulf %165, %176 : vector<8x32xf32>
    %178 = vector.broadcast %158 : vector<1x32xf32> to vector<8x32xf32>
    %179 = arith.mulf %178, %177 : vector<8x32xf32>
    %180 = vector.broadcast %159 : vector<1x32xf32> to vector<8x32xf32>
    %181 = arith.addf %179, %180 : vector<8x32xf32>
    %c0_97 = arith.constant 0 : index
    %c0_98 = arith.constant 0 : index
    %c0_99 = arith.constant 0 : index
    %182 = vector.load %arg19[%c0_97, %c0_98, %c0_99] : memref<1x8x32xf32, #tpu.memory_space<vmem>>, vector<1x8x32xf32>
    %183 = vector.shape_cast %182 : vector<1x8x32xf32> to vector<8x32xf32>
    %184 = vector.shape_cast %181 : vector<8x32xf32> to vector<1x8x32xf32>
    tpu.vector_store %arg19[%c0_97, %c0_98, %c0_99], %184 {strides = array<i32>} : memref<1x8x32xf32, #tpu.memory_space<vmem>>, vector<1x8x32xf32>,
    return
  }
  func.func @transform_0(%arg0: i32, %arg1: i32) -> (i32, i32, i32) {
    %c0_i32 = arith.constant 0 : i32
    %c0_i32_0 = arith.constant 0 : i32
    %c0_i32_1 = arith.constant 0 : i32
    return %arg0, %c0_i32, %c0_i32_0 : i32, i32, i32
  }
  func.func @transform_1(%arg0: i32, %arg1: i32) -> (i32, i32) {
    %c0_i32 = arith.constant 0 : i32
    %c0_i32_0 = arith.constant 0 : i32
    %c0_i32_1 = arith.constant 0 : i32
    return %c0_i32, %c0_i32_0 : i32, i32
  }
  func.func @transform_2(%arg0: i32, %arg1: i32) -> (i32, i32) {
    %c0_i32 = arith.constant 0 : i32
    %c0_i32_0 = arith.constant 0 : i32
    %c0_i32_1 = arith.constant 0 : i32
    return %c0_i32, %c0_i32_0 : i32, i32
  }
  func.func @transform_3(%arg0: i32, %arg1: i32) -> (i32, i32) {
    %c0_i32 = arith.constant 0 : i32
    %c0_i32_0 = arith.constant 0 : i32
    %c0_i32_1 = arith.constant 0 : i32
    return %c0_i32, %c0_i32_0 : i32, i32
  }
  func.func @transform_4(%arg0: i32, %arg1: i32) -> (i32, i32) {
    %c0_i32 = arith.constant 0 : i32
    %c0_i32_0 = arith.constant 0 : i32
    %c0_i32_1 = arith.constant 0 : i32
    return %c0_i32, %c0_i32_0 : i32, i32
  }
  func.func @transform_5(%arg0: i32, %arg1: i32) -> (i32, i32) {
    %c0_i32 = arith.constant 0 : i32
    %c0_i32_0 = arith.constant 0 : i32
    %c0_i32_1 = arith.constant 0 : i32
    return %c0_i32, %c0_i32_0 : i32, i32
  }
  func.func @transform_6(%arg0: i32, %arg1: i32) -> (i32, i32) {
    %c0_i32 = arith.constant 0 : i32
    %c0_i32_0 = arith.constant 0 : i32
    %c0_i32_1 = arith.constant 0 : i32
    return %c0_i32, %c0_i32_0 : i32, i32
  }
  func.func @transform_7(%arg0: i32, %arg1: i32) -> (i32, i32) {
    %c0_i32 = arith.constant 0 : i32
    %c0_i32_0 = arith.constant 0 : i32
    %c0_i32_1 = arith.constant 0 : i32
    return %c0_i32, %c0_i32_0 : i32, i32
  }
  func.func @transform_8(%arg0: i32, %arg1: i32) -> (i32, i32) {
    %c0_i32 = arith.constant 0 : i32
    %c0_i32_0 = arith.constant 0 : i32
    %c0_i32_1 = arith.constant 0 : i32
    return %c0_i32, %c0_i32_0 : i32, i32
  }
  func.func @transform_9(%arg0: i32, %arg1: i32) -> (i32, i32) {
    %c0_i32 = arith.constant 0 : i32
    %c0_i32_0 = arith.constant 0 : i32
    %c0_i32_1 = arith.constant 0 : i32
    return %c0_i32, %c0_i32_0 : i32, i32
  }
  func.func @transform_10(%arg0: i32, %arg1: i32) -> (i32, i32) {
    %c0_i32 = arith.constant 0 : i32
    %c0_i32_0 = arith.constant 0 : i32
    %c0_i32_1 = arith.constant 0 : i32
    return %c0_i32, %c0_i32_0 : i32, i32
  }
  func.func @transform_11(%arg0: i32, %arg1: i32) -> (i32, i32) {
    %c0_i32 = arith.constant 0 : i32
    %c0_i32_0 = arith.constant 0 : i32
    %c0_i32_1 = arith.constant 0 : i32
    return %c0_i32, %c0_i32_0 : i32, i32
  }
  func.func @transform_12(%arg0: i32, %arg1: i32) -> (i32, i32) {
    %c0_i32 = arith.constant 0 : i32
    %c0_i32_0 = arith.constant 0 : i32
    %c0_i32_1 = arith.constant 0 : i32
    return %c0_i32, %c0_i32_0 : i32, i32
  }
  func.func @transform_13(%arg0: i32, %arg1: i32) -> (i32, i32) {
    %c0_i32 = arith.constant 0 : i32
    %c0_i32_0 = arith.constant 0 : i32
    %c0_i32_1 = arith.constant 0 : i32
    return %c0_i32, %c0_i32_0 : i32, i32
  }
  func.func @transform_14(%arg0: i32, %arg1: i32) -> (i32, i32) {
    %c0_i32 = arith.constant 0 : i32
    %c0_i32_0 = arith.constant 0 : i32
    %c0_i32_1 = arith.constant 0 : i32
    return %c0_i32, %c0_i32_0 : i32, i32
  }
  func.func @transform_15(%arg0: i32, %arg1: i32) -> (i32, i32) {
    %c0_i32 = arith.constant 0 : i32
    %c0_i32_0 = arith.constant 0 : i32
    %c0_i32_1 = arith.constant 0 : i32
    return %c0_i32, %c0_i32_0 : i32, i32
  }
  func.func @transform_16(%arg0: i32, %arg1: i32) -> (i32, i32) {
    %c0_i32 = arith.constant 0 : i32
    %c0_i32_0 = arith.constant 0 : i32
    %c0_i32_1 = arith.constant 0 : i32
    return %c0_i32, %c0_i32_0 : i32, i32
  }
  func.func @transform_17(%arg0: i32, %arg1: i32) -> (i32, i32, i32) {
    %c0_i32 = arith.constant 0 : i32
    %c0_i32_0 = arith.constant 0 : i32
    return %arg0, %arg1, %c0_i32 : i32, i32, i32
  }
}

</mosaic_0001>

<bundles_post_ra>
// kernel: tpu_custom_call.1
= control target key start
LH: loop header
LB: loop body
LE: loop exit
PB: predicated region body
PF: predicated region fallthrough
CT: control target
= control target key end

     0   :  { %s3032_s0 = inlined_call_operand.hbm [shape: f32[2,8,32], index: 0, kind: input, shape index: {}]   ;;  %s3033_s1 = inlined_call_operand.vmem [shape: f32[32,32], index: 1, kind: input, shape index: {}]   ;;  %s3034_s2 = inlined_call_operand.vmem [shape: f32[1,32], index: 2, kind: input, shape index: {}]   ;;  %s3035_s3 = inlined_call_operand.vmem [shape: f32[32,32], index: 3, kind: input, shape index: {}]   ;;  %s3036_s4 = inlined_call_operand.vmem [shape: f32[1,32], index: 4, kind: input, shape index: {}]   ;;  %s3037_s5 = inlined_call_operand.vmem [shape: f32[32,32], index: 5, kind: input, shape index: {}]   ;;  %s3038_s6 = inlined_call_operand.vmem [shape: f32[1,32], index: 6, kind: input, shape index: {}]   ;;  %s3039_s7 = inlined_call_operand.hbm [shape: f32[32,32], index: 7, kind: input, shape index: {}]   ;;  %s3040_s8 = inlined_call_operand.vmem [shape: f32[1,32], index: 8, kind: input, shape index: {}]   ;;  %s3041_s9 = inlined_call_operand.vmem [shape: f32[1,32], index: 9, kind: input, shape index: {}]   ;;  %s3042_s10 = inlined_call_operand.vmem [shape: f32[1,32], index: 10, kind: input, shape index: {}]   ;;  %s3043_s11 = inlined_call_operand.hbm [shape: f32[32,64], index: 11, kind: input, shape index: {}]   ;;  %s3044_s12 = inlined_call_operand.vmem [shape: f32[1,64], index: 12, kind: input, shape index: {}]   ;;  %s3045_s13 = inlined_call_operand.vmem [shape: f32[64,32], index: 13, kind: input, shape index: {}]   ;;  %s3046_s14 = inlined_call_operand.vmem [shape: f32[1,32], index: 14, kind: input, shape index: {}]   ;;  %s3047_s15 = inlined_call_operand.vmem [shape: f32[1,32], index: 15, kind: input, shape index: {}]   ;;  %s3048_s16 = inlined_call_operand.vmem [shape: f32[1,32], index: 16, kind: input, shape index: {}]   ;;  %s3049_s17 = inlined_call_operand.hbm [shape: f32[2,8,32], index: 17, kind: output, shape index: {}]  }
   0x1   :  { %3059 = sst [smem:[#allocation20_spill]] %s3032_s0 }
   0x2   :  { %3060 = sst [smem:[#allocation21_spill]] %s3033_s1 }
   0x3   :  { %3061 = sst [smem:[#allocation22_spill]] %s3039_s7 }
   0x4   :  { %3062 = sst [smem:[#allocation23_spill]] %s3043_s11 }
   0x5   :  { %3063 = sst [smem:[#allocation24_spill]] %s3044_s12 }
   0x6   :  { %3064 = sst [smem:[#allocation25_spill]] %s3046_s14 }
   0x7   :  { %3065 = sst [smem:[#allocation26_spill]] %s3047_s15 }
   0x8   :  { %3066 = sst [smem:[#allocation27_spill]] %s3048_s16 }
   0x9   :  { %3067 = sst [smem:[#allocation28_spill]] %s3049_s17 }
   0xa   :  { %22 = vsyncpa [#allocation6], 0 }
   0xb   :  { %24 = vsyncpa [#allocation6 + $0x1], 0 }
   0xc   :  { %25 = vsyncpa [#allocation9], 0 }
   0xd   :  { %26 = vsyncpa [#allocation7], 0 }
   0xe   :  { %28 = vsyncpa [#allocation7 + $0x1], 0  ;;  %s2652_s24 = smov 0   ;;  %s2654_s25 = smov 0  }
   0xf   :  { %s2656_s26 = smov 0   ;;  %s2658_s27 = smov 0  }
  0x10   :  { %s2660_s28 = smov 0   ;;  %s2662_s29 = smov 0  }
  0x11 LB: > { %3068 = sst [smem:[#allocation15_spill]] %s2525_s24  ;;  %s2054_s0 = sadd.s32 4294967295, %s2545_s29   ;;  %s2545_s29 = sphi %s2662_s29, %s34_s29   ;;  %s2541_s28 = sphi %s2660_s28, %s3098_s28   ;;  %s2537_s27 = sphi %s2658_s27, %s3097_s27   ;;  %s2533_s26 = sphi %s2656_s26, %s3101_s26   ;;  %s2529_s25 = sphi %s2654_s25, %s3100_s25   ;;  %s2525_s24 = sphi %s2652_s24, %s3099_s24  }
  0x12   : > { %3069 = sst [smem:[#allocation16_spill]] %s2537_s27  ;;  %s2055_s30 = sadd.s32 4294967294, %s2545_s29  }
  0x13   : > { %3070 = sst [smem:[#allocation17_spill]] %s2541_s28  ;;  %p66_p0 = scmp.ne.s32.totalorder %s2529_s25, %s2525_s24 }
  0x14   : > { %p2686_p1 = scmp.eq.s32.totalorder %s2054_s0, 0  ;;  %p2690_p2 = scmp.eq.s32.totalorder %s2054_s0, 1 }
  0x15   : > { %p434_p3 = scmp.eq.s32.totalorder %s2055_s30, 1  ;;  %p2056_p5 = scmp.ge.s32.totalorder %s2545_s29, 1 }
  0x16   : > { %s3071_s18 = scalar_select %p2686_p1, 1, 0 }
  0x17   : > { %p2696_p4 = por %p2686_p1, %p66_p0  ;;  %p2701_p6 = por %p434_p3, %p66_p0 }
  0x18   : > { %p441_p7 = scmp.lt.s32.totalorder %s2545_s29, 3  ;;  %s2547_s22 = smov [#allocation8]  }
  0x19   : > { %s3073_s1 = scalar_select %p2696_p4, 1, 0 }
  0x1a   : > { %s3074_s20 = scalar_select %p2701_p6, 1, 0 }
  0x1b   : > { %p2706_p8 = pnand %p2056_p5, %p441_p7  ;;  %s471_s23 = sshll.u32 %s2547_s22, 4  ;;  %s472_s23 = int_to_ptr.vmem [resolvable:$true] %s471_s23 }
  0x1c   : > { %3075 = sst [smem:[#allocation18_spill]] %s3074_s20  ;;  %s2548_s30 = smov [#allocation10]  }
  0x1d   : > { %p2271_p9 = pneg %p2706_p8  ;;  %s493_s20 = sshll.u32 %s2548_s30, 4  ;;  %s494_s20 = int_to_ptr.vmem [resolvable:$true] %s493_s20 }
  0x1e   : > { %s2392_s24 = scalar_lea.vmem %s472_s23, 512  ;;  %p2400_p5 = scmp.lt.s32.totalorder %s472_s23, %s472_s23 }
  0x1f   : > { %p2715_p11 = pnand %p2271_p9, %p2686_p1  ;;  %p2393_p13 = scmp.ne.s32.totalorder %s472_s23, %s2392_s24 }
  0x20   : > { %p2401_p7 = scmp.lt.s32.totalorder %s2392_s24, %s2392_s24 }
  0x21   : > { %p2383_p12 = pneg %p2715_p11 }
  0x22   : > { %p2402_p10 = por %p2401_p7, %p2400_p5 }
  0x23   : > { %p2395_p0 = pnand %p2393_p13, %p2383_p12 }
  0x25   : > { %p2396_p3 = pneg %p2395_p0 }
  0x27   : > { %p2403_p9 = pnand %p2402_p10, %p2396_p3 }
  0x29   : > { %2406 = shalt.err (!%p2403_p9)
}
  0x2a   : > { %s2549_s22 = smov 128   ;;  %s2550_s17 = smov 8  }
  0x2b   : > { %s3078_s7 = sld [smem:[#allocation22_spill]]  ;;  %s2418_s15 = scalar_lea.vmem %s494_s20, 512 }
  0x2c   : > { %p2419_p6 = scmp.ne.s32.totalorder %s494_s20, %s2418_s15  ;;  %p2426_p1 = scmp.lt.s32.totalorder %s494_s20, %s494_s20 }
  0x2d   : > { %p2427_p4 = scmp.lt.s32.totalorder %s2418_s15, %s2418_s15 }
  0x2e   : > { %p2421_p13 = pnand %p2419_p6, %p2383_p12 }
  0x2f   : > { %p2428_p5 = por %p2427_p4, %p2426_p1 }
  0x30   : > { %p2422_p0 = pneg %p2421_p13 }
  0x31   : > { %2274 = dma.hbm_to_vmem [thread:$0]  (!%p2715_p11), %s3078_s7, 512, %s472_s23, [#allocation9], %s2549_s22, %s2549_s22, %s2550_s17  }
  0x32   : > { %p2429_p10 = pnand %p2428_p5, %p2422_p0 }
  0x34   : > { %2432 = shalt.err (!%p2429_p10)
}
  0x35   : > { %s3079_s11 = sld [smem:[#allocation23_spill]]  ;;  %s46_s15 = sadd.s32 1, %s2541_s28 }
  0x36   : > { %s53_s16 = sadd.s32 1, %s2533_s26  ;;  %p48_p1 = scmp.ge.s32.totalorder %s46_s15, 2 }
  0x37   : > { %p60_p4 = scmp.ne.s32.totalorder %s2533_s26, %s2529_s25  ;;  %p61_p6 = scmp.eq.s32.totalorder %s2545_s29, 0 }
  0x38   : > { %p2288_p12 = scmp.lt.s32.totalorder %s2545_s29, 2  ;;  %s3103_s15 = smov (%p48_p1, %s46_s15), 0 }
  0x39   : > { %3080 = sst [smem:[#allocation19_spill]] %s3103_s15  ;;  %p62_p3 = por %p61_p6, %p60_p4 }
  0x3a   : > { %p2747_p7 = por %p2690_p2, %p60_p4  ;;  %s50_s23 = ssub.s32 %s2541_s28, %s3103_s15 }
  0x3b   : > { %2277 = dma.hbm_to_vmem [thread:$0]  (!%p2715_p11), %s3079_s11, 512, %s494_s20, [#allocation9], %s2549_s22, %s2549_s22, %s2550_s17  }
  0x3c   : > { %s522_s0 = sand.u32 1, %s2533_s26   ;;  %p51_p9 = scmp.eq.s32.totalorder %s50_s23, 0 }
  0x3d   : > { %s2060_s17 = sshll.u32 %s522_s0, 3  ;;  %s2061_s20 = sshll.u32 %s2541_s28, 7 }
  0x3e   : > { %s2756_s22 = scalar_select %p51_p9, %s2533_s26, %s53_s16  }
  0x3f   : > { %s3082_s7 = sld [smem:[#allocation20_spill]]  ;;  %s526_s14 = scalar_lea.vmem [#allocation5], %s2060_s17 }
  0x40   : > { %s533_s12 = sshll.u32 %s526_s14, 4  ;;  %p2763_p11 = pnand %p2288_p12, %p62_p3  ;;  %s534_s12 = int_to_ptr.vmem [resolvable:$true] %s533_s12 }
  0x41   : > { %s523_s15 = scalar_lea.sflag [#allocation6], %s522_s0  ;;  %s2446_s23 = scalar_lea.vmem %s534_s12, 128 }
  0x42   : > { %p2435_p2 = pneg %p2763_p11  ;;  %p2447_p13 = scmp.ne.s32.totalorder %s534_s12, %s2446_s23 }
  0x43   : > { %s2551_s16 = smov [#allocation5]  }
  0x44   : > { %p2449_p0 = pnand %p2447_p13, %p2435_p2  ;;  %s2451_s28 = sshll.u32 %s2551_s16, 4  ;;  %s2452_s28 = int_to_ptr.vmem [resolvable:$false] %s2451_s28 }
  0x45   : > { %s531_s11 = scalar_lea.hbm %s3082_s7, %s2061_s20  ;;  %s2453_s7 = scalar_lea.vmem %s2452_s28, 256 }
  0x46   : > { %p2450_p5 = pneg %p2449_p0  ;;  %p2454_p10 = scmp.lt.s32.totalorder %s534_s12, %s2452_s28 }
  0x47   : > { %p2455_p1 = scmp.lt.s32.totalorder %s2453_s7, %s2446_s23 }
  0x49   : > { %p2456_p4 = por %p2455_p1, %p2454_p10 }
  0x4b   : > { %p2457_p6 = pnand %p2456_p4, %p2450_p5 }
  0x4d   : > { %2460 = shalt.err (!%p2457_p6)
}
  0x4e   : > { %2281 = dma.hbm_to_vmem [thread:$0]  (!%p2763_p11), %s531_s11, 128, %s534_s12, %s523_s15  }
  0x4f   : > { %542 = sbr.rel (%p2706_p8) target bundleno = 2611 (0xa33), region = 88  ;;  %s2774_s14 = sand.u32 (!%p2706_p8), 1, %s2529_s25  }
  0x50   : > { %s2063_s0 = sshll.u32 (!%p2706_p8), %s2774_s14, 3  ;;  %s545_s17 = scalar_lea.sflag (!%p2706_p8), [#allocation6], %s2774_s14 }
  0x51   : > { %s548_s28 = scalar_lea.vmem (!%p2706_p8), [#allocation5], %s2063_s0  ;;  %p3084_p12 = scmp.ne.s32.totalorder (!%p2706_p8), %s3073_s1, 0 }
  0x54   : > { %2512 = dma.done.wait (%p3084_p12), %s545_s17, 128  }
  0x55   : > { %2514 = vsyncadd (%p3084_p12), %s545_s17, 4294967168  ;;  %p3085_p3 = scmp.ne.s32.totalorder %s3071_s18, 0 }
  0x57   : > { %2516 = dma.done.wait (%p3085_p3), [#allocation9], 1024  }
  0x58   : > { %2518 = vsyncadd (%p3085_p3), [#allocation9], 4294966272  ;;  %v2552_v0 = vmov 0.0   ;;  %vm2553_vm0 = vmmov 0   ;;  %s3086_s1 = sld [smem:[#allocation21_spill]]  ;;  %v615_v3 = vld [vmem:[%s3035_s3 + $0x18] sm:$0xff] }
  0x59   : > { %2167 = vmatprep.subr.mxu0 %v2552_v0  ;;  %2175 = vmatprep.mubr.msk.f32.mxu0 %vm2553_vm0, %v2552_v0  ;;  %v614_v5 = vld [vmem:[%s3035_s3 + $0x10] sm:$0xff]  ;;  %v613_v6 = vld [vmem:[%s3035_s3 + $0x8] sm:$0xff]  ;;  %vm623_vm1 = vcmask 261120   ;;  %v612_v9 = vld [vmem:[%s3035_s3] sm:$0xff]  ;;  %s2554_s30 = smov 104   ;;  %s2555_s24 = smov 120  }
  0x5a   : > { %2145 = vmatprep.subr.mxu1 %v2552_v0  ;;  %2153 = vmatprep.mubr.msk.f32.mxu1 %vm2553_vm0, %v2552_v0  ;;  %v2818_v8 = vld [vmem:[%s548_s28] sm:$0xff]  ;;  %v2071_v11 = vld [vmem:[%s3034_s2] ss:$0 sm:$0xff]  ;;  %s2556_s19 = smov 112   ;;  %v698_v21 = vld [vmem:[%s3037_s5 + $0x8] sm:$0xff]  ;;  %vm810_vm2 = vcmask 64512  }
  0x5b   : > { %2146 = vmatpush3.msra.mxu1 %v615_v3  ;;  %v700_v10 = vld [vmem:[%s3037_s5 + $0x18] sm:$0xff]  ;;  %v2067_v18 = vld [vmem:[%s3036_s4] ss:$0 sm:$0xff]  ;;  %v699_v19 = vld [vmem:[%s3037_s5 + $0x10] sm:$0xff]  ;;  %s2557_s20 = smov 8   ;;  %vm1234_vm3 = vcmask 130112  }
  0x5c   : > { %2147 = vmatprep.subr.mxu1 %v2552_v0  ;;  %v697_v22 = vld [vmem:[%s3037_s5] sm:$0xff]  ;;  %vm1404_vm4 = vcmask 195712   ;;  %vm1574_vm5 = vcmask 261312   ;;  %s3087_s18 = sld [smem:[#allocation24_spill]]  ;;  %vm1826_vm9 = vcmask 523264   ;;  %s606_s28 = scalar_lea.vmem [#allocation11], %s2063_s0 }
  0x5d   : > { %2148 = vmatpush3.msra.mxu1 %v614_v5  ;;  %v2069_v34 = vld [vmem:[%s3038_s6] ss:$0 sm:$0xff]  ;;  %s3090_s7 = sld [smem:[#allocation26_spill]]  ;;  %s1954_s15 = sshll.u32 %s606_s28, 4  ;;  %s1955_s15 = int_to_ptr.vmem [resolvable:$true] %s1954_s15 }
  0x5e   : > { %v822_v1 = vld [vmem:[%s3086_s1 + $0x18] sm:$0xff]  ;;  %v821_v2 = vld [vmem:[%s3086_s1 + $0x10] sm:$0xff]  ;;  %v820_v4 = vld [vmem:[%s3086_s1 + $0x8] sm:$0xff]  ;;  %2149 = vmatprep.subr.mxu1 %v2552_v0  ;;  %s3091_s12 = sld [smem:[#allocation27_spill]]  ;;  %s1940_s23 = scalar_lea.sflag [#allocation7], %s2774_s14 }
  0x5f   : > { %2168 = vmatpush3.msra.mxu0 %v822_v1  ;;  %v819_v7 = vld [vmem:[%s3086_s1] sm:$0xff]  ;;  %2150 = vmatpush3.msra.mxu1 %v613_v6  ;;  %s2461_s16 = scalar_lea.vmem %s1955_s15, 128 }
  0x60   : > { %2169 = vmatprep.subr.mxu0 %v2552_v0  ;;  %2151 = vmatprep.subr.mxu1 %v2552_v0  ;;  %p2462_p8 = scmp.ne.s32.totalorder %s1955_s15, %s2461_s16 }
  0x61   : > { %2170 = vmatpush3.msra.mxu0 %v821_v2  ;;  %2152 = vmatpush3.msra.mxu1 %v612_v9 }
  0x62   : > { %2171 = vmatprep.subr.mxu0 %v2552_v0  ;;  %2154 = vmatmul.mubr.msk.f32.vlgmr.msra.gmra.mxu1 %vm623_vm1, %v2818_v8  ;;  %p2463_p9 = pnand %p2462_p8, %p2747_p7 }
  0x63   : > { %2172 = vmatpush3.msra.mxu0 %v820_v4  ;;  %2156 = vmatprep.subr.mxu1 %v2552_v0 }
  0x64   : > { %2173 = vmatprep.subr.mxu0 %v2552_v0  ;;  %2164 = vmatprep.mubr.msk.f32.mxu1 %vm2553_vm0, %v2552_v0  ;;  %p2464_p11 = pneg %p2463_p9 }
  0x65   : > { %2174 = vmatpush3.msra.mxu0 %v819_v7  ;;  %2157 = vmatpush3.msra.mxu1 %v700_v10 }
  0x66   : > { %2176 = vmatmul.mubr.msk.f32.vlgmr.msra.gmra.mxu0 %vm623_vm1, %v2818_v8  ;;  %2188 = vmatprep.subr.mxu0 %v2552_v0 }
  0x67   : > { %2190 = vmatprep.mubr.msk.f32.mxu0 %vm2553_vm0, %v2552_v0  ;;  %2158 = vmatprep.subr.mxu1 %v2552_v0 }
  0x68   : > { %2159 = vmatpush3.msra.mxu1 %v699_v19 }
  0x69   : > { %2160 = vmatprep.subr.mxu1 %v2552_v0 }
  0x6a   : > { %2161 = vmatpush3.msra.mxu1 %v698_v21 }
  0x6b   : > { %2162 = vmatprep.subr.mxu1 %v2552_v0 }
  0x6c   : > { %2163 = vmatpush3.msra.mxu1 %v697_v22 }
  0x6d   : > { %2165 = vmatmul.mubr.msk.f32.vlgmr.msra.gmra.mxu1 %vm623_vm1, %v2818_v8  ;;  %2178 = vmatprep.subr.mxu1 %v2552_v0 }
  0x6e   : > { %2180 = vmatprep.mubr.msk.f32.mxu1 %vm2553_vm0, %v2552_v0 }
 0x122   : > { %v693_v14 = vpop.f32.mrf.mxu1 }
 0x123   : > { %v694_v20 = vadd.f32 %v2067_v18, %v693_v14 }
 0x124   : > { %v2155_v17 = vpop.f32.mrf.mxu1 }
 0x126   : > { %v900_v12 = vpop.f32.mrf.mxu0 }
 0x127   : > { %v901_v13 = vadd.f32 %v2071_v11, %v900_v12 }
 0x128   : > { %v2177_v15 = vpop.f32.mrf.mxu0 }
 0x129   : > { %v904_v16 = vmul.f32 0.35355338, %v901_v13 }
 0x12b   : > { %1407 = vrot.lane.b32.xlu1 %v904_v16, %s2554_s30  ;;  %1067 = vrot.lane.b32.xlu0 %v904_v16, %s2555_s24 }
 0x12d   : > { %v774_v35 = vpop.f32.mrf.mxu1 }
 0x12e   : > { %v775_v36 = vadd.f32 %v2069_v34, %v774_v35 }
 0x12f   : > { %1237 = vrot.lane.b32.xlu0 %v904_v16, %s2556_s19  ;;  %v2166_v37 = vpop.f32.mrf.mxu1 }
 0x130   : > { %815 = vst.msk [vmem:[#allocation3] sm:$0xff] %vm623_vm1, %v775_v36 }
 0x137   : > { %v991_v38 = vld [vmem:[#allocation3] sm:$0xff] }
 0x154   : > { %778 = vxpose.xlu1.b32.start.end [1/1] (short) (narrow) %v694_v20, 32 }
 0x19d   : > { %v1408_v23 = vpop.permute.xlu1 %1407  ;;  %v1068_v28 = vpop.permute.xlu0 %1067 }
 0x1a1   : > { %v1238_v32 = vpop.permute.xlu0 %1237 }
 0x1d0   : > { %v794_v24 = vpop.trf.xlu1 }
 0x1d1   : > { %811 = vst.msk [vmem:[#allocation2] sm:$0xff] %vm810_vm2, %v794_v24 }
 0x1d4   : > { %v795_v25 = vpop.trf.xlu1 }
 0x1d5   : > { %812 = vst.msk [vmem:[#allocation2 + $0x8] sm:$0xff] %vm810_vm2, %v795_v25  ;;  %v1580_v25 = vld [vmem:[#allocation8 + $0x18] sm:$0xff] }
 0x1d8   : > { %v796_v26 = vpop.trf.xlu1  ;;  %v905_v27 = vld [vmem:[#allocation2] sm:$0xff] }
 0x1d9   : > { %813 = vst.msk [vmem:[#allocation2 + $0x10] sm:$0xff] %vm810_vm2, %v796_v26  ;;  %2179 = vmatpush3.msra.mxu1 %v905_v27  ;;  %v1579_v26 = vld [vmem:[#allocation8 + $0x10] sm:$0xff] }
 0x1da   : > { %2181 = vmatmul.mubr.msk.f32.vlgmr.msra.gmra.mxu1 %vm810_vm2, %v904_v16  ;;  %2183 = vmatprep.subr.mxu1 %v2552_v0 }
 0x1db   : > { %2185 = vmatprep.mubr.msk.f32.mxu1 %vm2553_vm0, %v2552_v0  ;;  %2184 = vmatpush3.msra.mxu1 %v991_v38 }
 0x1dc   : > { %v797_v29 = vpop.trf.xlu1  ;;  %v1066_v30 = vld [vmem:[#allocation2 + $0x8] sm:$0xff]  ;;  %2193 = vmatprep.subr.mxu1 %v2552_v0 }
 0x1dd   : > { %814 = vst.msk [vmem:[#allocation2 + $0x18] sm:$0xff] %vm810_vm2, %v797_v29  ;;  %2189 = vmatpush3.msra.mxu0 %v1066_v30  ;;  %v1577_v30 = vld [vmem:[#allocation8] sm:$0xff] }
 0x1de   : > { %2191 = vmatmul.mubr.msk.f32.vlgmr.msra.gmra.mxu0 %vm810_vm2, %v1068_v28  ;;  %2198 = vmatprep.subr.mxu0 %v2552_v0  ;;  %v1578_v28 = vld [vmem:[#allocation8 + $0x8] sm:$0xff] }
 0x1df   : > { %2200 = vmatprep.mubr.msk.f32.mxu0 %vm2553_vm0, %v2552_v0 }
 0x1e0   : > { %v1236_v31 = vld [vmem:[#allocation2 + $0x10] sm:$0xff] }
 0x1e1   : > { %2199 = vmatpush3.msra.mxu0 %v1236_v31 }
 0x1e2   : > { %2201 = vmatmul.mubr.msk.f32.vlgmr.msra.gmra.mxu0 %vm810_vm2, %v1238_v32  ;;  %2208 = vmatprep.subr.mxu0 %v2552_v0 }
 0x1e3   : > { %2210 = vmatprep.mubr.msk.f32.mxu0 %vm2553_vm0, %v2552_v0 }
 0x1e4   : > { %v1406_v33 = vld [vmem:[#allocation2 + $0x18] sm:$0xff] }
 0x1e5   : > { %2209 = vmatpush3.msra.mxu0 %v1406_v33 }
 0x1e6   : > { %2211 = vmatmul.mubr.msk.f32.vlgmr.msra.gmra.mxu0 %vm810_vm2, %v1408_v23  ;;  %2218 = vmatprep.subr.mxu0 %v2552_v0 }
 0x1e7   : > { %2226 = vmatprep.mubr.msk.f32.mxu0 %vm2553_vm0, %v2552_v0  ;;  %2219 = vmatpush3.msra.mxu0 %v1580_v25 }
 0x1e8   : > { %2220 = vmatprep.subr.mxu0 %v2552_v0 }
 0x1e9   : > { %2221 = vmatpush3.msra.mxu0 %v1579_v26 }
 0x1ea   : > { %2222 = vmatprep.subr.mxu0 %v2552_v0 }
 0x1eb   : > { %2223 = vmatpush3.msra.mxu0 %v1578_v28 }
 0x1ec   : > { %2224 = vmatprep.subr.mxu0 %v2552_v0 }
 0x1ed   : > { %2225 = vmatpush3.msra.mxu0 %v1577_v30 }
 0x1ee   : > { %2240 = vmatprep.subr.mxu0 %v2552_v0 }
 0x29a   : > { %v976_v39 = vpop.f32.mrf.mxu1 }
 0x29b   : > { %v980_v40 = vsel %vm810_vm2, %v976_v39, -inf }
 0x29c   : > { %981 = vmax.xlane.f32.xlu0 %v980_v40  ;;  %v2182_v41 = vpop.f32.mrf.mxu1  ;;  %v2081_v40 = vld [vmem:[%s3040_s8] ss:$0 sm:$0xff] }
 0x29e   : > { %v1137_v42 = vpop.f32.mrf.mxu0 }
 0x29f   : > { %v1141_v43 = vsel %vm810_vm2, %v1137_v42, -inf }
 0x2a0   : > { %v2192_v44 = vpop.f32.mrf.mxu0  ;;  %1142 = vmax.xlane.f32.xlu0 %v1141_v43 }
 0x2a2   : > { %v1307_v45 = vpop.f32.mrf.mxu0 }
 0x2a3   : > { %v1311_v46 = vsel %vm810_vm2, %v1307_v45, -inf }
 0x2a4   : > { %v2202_v47 = vpop.f32.mrf.mxu0  ;;  %1312 = vmax.xlane.f32.xlu0 %v1311_v46 }
 0x2a6   : > { %v1477_v48 = vpop.f32.mrf.mxu0 }
 0x2a7   : > { %v1481_v49 = vsel %vm810_vm2, %v1477_v48, -inf }
 0x2a8   : > { %1482 = vmax.xlane.f32.xlu1 %v1481_v49  ;;  %v2212_v50 = vpop.f32.mrf.mxu0 }
 0x2ba   : > { %1154 = vrot.lane.b32.xlu0 %v991_v38, %s2555_s24  ;;  %s2559_s24 = smov 24  }
 0x2be   : > { %1324 = vrot.lane.b32.xlu0 %v991_v38, %s2556_s19  ;;  %s3089_s19 = sld [smem:[#allocation16_spill]] }
 0x2c4   : > { %s2092_s21 = sshll.u32 %s3089_s19, 7 }
 0x325   : > { %v982_v51 = vpop.xlane.xlu0 %981 }
 0x326   : > { %v983_v52 = vsub.f32 %v976_v39, %v982_v51  ;;  %v1703_v51 = vld [vmem:[#allocation10 + $0x18] sm:$0xff] }
 0x328   : > { %v984_v53 = vmul.f32 1.442695, %v983_v52  ;;  %v1702_v52 = vld [vmem:[#allocation10 + $0x10] sm:$0xff] }
 0x329   : > { %v1143_v54 = vpop.xlane.xlu0 %1142 }
 0x32a   : > { %2353 = vpow2.f32 %v984_v53  ;;  %v1144_v55 = vsub.f32 %v1137_v42, %v1143_v54  ;;  %v1701_v53 = vld [vmem:[#allocation10 + $0x8] sm:$0xff] }
 0x32c   : > { %v1145_v56 = vmul.f32 1.442695, %v1144_v55 }
 0x32d   : > { %v1313_v57 = vpop.xlane.xlu0 %1312 }
 0x32e   : > { %2355 = vpow2.f32 %v1145_v56  ;;  %v1314_v58 = vsub.f32 %v1307_v45, %v1313_v57 }
 0x330   : > { %v1315_v59 = vmul.f32 1.442695, %v1314_v58 }
 0x331   : > { %v1483_v60 = vpop.xlane.xlu1 %1482  ;;  %v1155_v9 = vpop.permute.xlu0 %1154 }
 0x332   : > { %2357 = vpow2.f32 %v1315_v59  ;;  %v1484_v61 = vsub.f32 %v1477_v48, %v1483_v60 }
 0x334   : > { %v1485_v62 = vmul.f32 1.442695, %v1484_v61 }
 0x335   : > { %v1325_v10 = vpop.permute.xlu0 %1324 }
 0x336   : > { %2359 = vpow2.f32 %v1485_v62 }
 0x337   : > { %v2354_v63 = vpop.eup %2353 }
 0x338   : > { %v986_v1 = vsel %vm810_vm2, %v2354_v63, 0.0 }
 0x339   : > { %987 = vadd.xlane.f32.xlu0 %v986_v1 }
 0x33b   : > { %v2356_v2 = vpop.eup %2355 }
 0x33c   : > { %v1147_v3 = vsel %vm810_vm2, %v2356_v2, 0.0 }
 0x33d   : > { %1148 = vadd.xlane.f32.xlu0 %v1147_v3 }
 0x33f   : > { %v2358_v4 = vpop.eup %2357 }
 0x340   : > { %v1317_v5 = vsel %vm810_vm2, %v2358_v4, 0.0 }
 0x341   : > { %1318 = vadd.xlane.f32.xlu0 %v1317_v5  ;;  %v1818_v5 = vld [vmem:[%s3045_s13 + $0x38] sm:$0xff] }
 0x343   : > { %v2360_v6 = vpop.eup %2359 }
 0x344   : > { %v1487_v7 = vsel %vm810_vm2, %v2360_v6, 0.0 }
 0x345   : > { %1488 = vadd.xlane.f32.xlu0 %v1487_v7  ;;  %v1816_v7 = vld [vmem:[%s3045_s13 + $0x28] sm:$0xff] }
 0x35b   : > { %1494 = vrot.lane.b32.xlu0 %v991_v38, %s2554_s30  ;;  %s2558_s30 = smov 16  }
 0x3c2   : > { %v988_v11 = vpop.xlane.xlu0 %987 }
 0x3c3   : > { %2361 = vrcp.f32 %v988_v11  ;;  %v1813_v11 = vld [vmem:[%s3045_s13 + $0x10] sm:$0xff] }
 0x3c6   : > { %v1149_v12 = vpop.xlane.xlu0 %1148 }
 0x3c7   : > { %2363 = vrcp.f32 %v1149_v12  ;;  %v1812_v12 = vld [vmem:[%s3045_s13 + $0x8] sm:$0xff] }
 0x3ca   : > { %v1319_v13 = vpop.xlane.xlu0 %1318 }
 0x3cb   : > { %2365 = vrcp.f32 %v1319_v13  ;;  %v1811_v13 = vld [vmem:[%s3045_s13] sm:$0xff] }
 0x3ce   : > { %v1489_v14 = vpop.xlane.xlu0 %1488 }
 0x3cf   : > { %2367 = vrcp.f32 %v1489_v14  ;;  %v2085_v14 = vld [vmem:[%s3087_s18] ss:$0 sm:$0xff] }
 0x3d0   : > { %v2362_v15 = vpop.eup %2361 }
 0x3d1   : > { %v990_v16 = vmul.f32 %v2362_v15, %v2354_v63  ;;  %v2083_v63 = vld [vmem:[%s3041_s9] ss:$0 sm:$0xff] }
 0x3d2   : > { %v1495_v21 = vpop.permute.xlu0 %1494 }
 0x3d3   : > { %2186 = vmatmul.mubr.msk.f32.vlgmr.msra.gmra.mxu1 %vm810_vm2, %v990_v16 }
 0x3d4   : > { %v2364_v17 = vpop.eup %2363  ;;  %2194 = vmatpush3.msra.mxu1 %v1155_v9  ;;  %2195 = vmatprep.mubr.msk.f32.mxu1 %vm2553_vm0, %v2552_v0  ;;  %v1815_v9 = vld [vmem:[%s3045_s13 + $0x20] sm:$0xff] }
 0x3d5   : > { %2203 = vmatprep.subr.mxu1 %v2552_v0  ;;  %v1151_v18 = vmul.f32 %v2364_v17, %v2356_v2  ;;  %v2084_v2 = vld [vmem:[%s3042_s10] ss:$0 sm:$0xff] }
 0x3d7   : > { %2196 = vmatmul.mubr.msk.f32.vlgmr.msra.gmra.mxu1 %vm810_vm2, %v1151_v18 }
 0x3d8   : > { %v2366_v19 = vpop.eup %2365  ;;  %2204 = vmatpush3.msra.mxu1 %v1325_v10  ;;  %2205 = vmatprep.mubr.msk.f32.mxu1 %vm2553_vm0, %v2552_v0  ;;  %v1814_v10 = vld [vmem:[%s3045_s13 + $0x18] sm:$0xff] }
 0x3d9   : > { %2213 = vmatprep.subr.mxu1 %v2552_v0  ;;  %v1321_v20 = vmul.f32 %v2366_v19, %v2358_v4 }
 0x3db   : > { %2206 = vmatmul.mubr.msk.f32.vlgmr.msra.gmra.mxu1 %vm810_vm2, %v1321_v20 }
 0x3dc   : > { %v2368_v22 = vpop.eup %2367  ;;  %2214 = vmatpush3.msra.mxu1 %v1495_v21  ;;  %2215 = vmatprep.mubr.msk.f32.mxu1 %vm2553_vm0, %v2552_v0 }
 0x3dd   : > { %v1491_v23 = vmul.f32 %v2368_v22, %v2360_v6  ;;  %2229 = vmatprep.subr.mxu1 %v2552_v0  ;;  %v1817_v6 = vld [vmem:[%s3045_s13 + $0x30] sm:$0xff] }
 0x3df   : > { %2216 = vmatmul.mubr.msk.f32.vlgmr.msra.gmra.mxu1 %vm810_vm2, %v1491_v23 }
 0x3e0   : > { %2237 = vmatprep.mubr.msk.f32.mxu1 %vm2553_vm0, %v2552_v0  ;;  %2230 = vmatpush3.msra.mxu1 %v1703_v51 }
 0x3e1   : > { %2231 = vmatprep.subr.mxu1 %v2552_v0 }
 0x3e2   : > { %2232 = vmatpush3.msra.mxu1 %v1702_v52 }
 0x3e3   : > { %2233 = vmatprep.subr.mxu1 %v2552_v0 }
 0x3e4   : > { %2234 = vmatpush3.msra.mxu1 %v1701_v53 }
 0x3e5   : > { %2235 = vmatprep.subr.mxu1 %v2552_v0 }
 0x493   : > { %v1061_v24 = vpop.f32.mrf.mxu1 }
 0x494   : > { %1065 = vst.msk [vmem:[#allocation4] sm:$0xff] %vm810_vm2, %v1061_v24 }
 0x495   : > { %v2187_v27 = vpop.f32.mrf.mxu1 }
 0x497   : > { %v1226_v29 = vpop.f32.mrf.mxu1 }
 0x498   : > { %1231 = vrot.lane.b32.xlu0 %v1226_v29, %s2557_s20 }
 0x499   : > { %v2197_v31 = vpop.f32.mrf.mxu1 }
 0x49b   : > { %v1396_v32 = vpop.f32.mrf.mxu1 }
 0x49c   : > { %1401 = vrot.lane.b32.xlu1 %v1396_v32, %s2558_s30  ;;  %s3092_s30 = sld [smem:[#allocation28_spill]] }
 0x49d   : > { %v2207_v33 = vpop.f32.mrf.mxu1 }
 0x49f   : > { %v1566_v34 = vpop.f32.mrf.mxu1 }
 0x4a0   : > { %1571 = vrot.lane.b32.xlu0 %v1566_v34, %s2559_s24  ;;  %s3088_s24 = sld [smem:[#allocation25_spill]] }
 0x4a1   : > { %v2217_v35 = vpop.f32.mrf.mxu1 }
 0x50a   : > { %v1232_v36 = vpop.permute.xlu0 %1231 }
 0x50b   : > { %1235 = vst.msk [vmem:[#allocation4] sm:$0xff] %vm1234_vm3, %v1232_v36 }
 0x50e   : > { %v1402_v37 = vpop.permute.xlu1 %1401 }
 0x50f   : > { %1405 = vst.msk [vmem:[#allocation4] sm:$0xff] %vm1404_vm4, %v1402_v37  ;;  %v2560_v37 = vmov -1.0  }
 0x512   : > { %v1572_v38 = vpop.permute.xlu0 %1571 }
 0x513   : > { %1575 = vst.msk [vmem:[#allocation4] sm:$0xff] %vm1574_vm5, %v1572_v38 }
 0x51a   : > { %v1576_v39 = vld [vmem:[#allocation4] sm:$0xff] }
 0x51b   : > { %2227 = vmatmul.mubr.msk.f32.vlgmr.msra.gmra.mxu0 %vm623_vm1, %v1576_v39 }
 0x51c   : > { %2256 = vmatprep.mubr.msk.f32.mxu0 %vm2553_vm0, %v2552_v0  ;;  %2241 = vmatpush3.msra.mxu0 %v1818_v5 }
 0x51d   : > { %2242 = vmatprep.subr.mxu0 %v2552_v0 }
 0x51e   : > { %2243 = vmatpush3.msra.mxu0 %v1817_v6 }
 0x51f   : > { %2244 = vmatprep.subr.mxu0 %v2552_v0 }
 0x520   : > { %2245 = vmatpush3.msra.mxu0 %v1816_v7 }
 0x521   : > { %2246 = vmatprep.subr.mxu0 %v2552_v0 }
 0x522   : > { %2247 = vmatpush3.msra.mxu0 %v1815_v9 }
 0x523   : > { %2248 = vmatprep.subr.mxu0 %v2552_v0 }
 0x524   : > { %2249 = vmatpush3.msra.mxu0 %v1814_v10 }
 0x525   : > { %2250 = vmatprep.subr.mxu0 %v2552_v0 }
 0x526   : > { %2251 = vmatpush3.msra.mxu0 %v1813_v11 }
 0x527   : > { %2252 = vmatprep.subr.mxu0 %v2552_v0 }
 0x528   : > { %2253 = vmatpush3.msra.mxu0 %v1812_v12 }
 0x529   : > { %2254 = vmatprep.subr.mxu0 %v2552_v0 }
 0x52a   : > { %2255 = vmatpush3.msra.mxu0 %v1811_v13 }
 0x5db   : > { %v1657_v41 = vpop.f32.mrf.mxu0 }
 0x5dc   : > { %v1658_v42 = vadd.f32 %v2081_v40, %v1657_v41 }
 0x5dd   : > { %v2228_v43 = vpop.f32.mrf.mxu0 }
 0x5de   : > { %v1661_v44 = vadd.f32 %v1658_v42, %v2818_v8  ;;  %v1700_v8 = vld [vmem:[#allocation10] sm:$0xff] }
 0x5df   : > { %2236 = vmatpush3.msra.mxu1 %v1700_v8  ;;  %v2087_v43 = vld [vmem:[%s3088_s24] ss:$0 sm:$0xff]  ;;  %s1952_s24 = scalar_lea.hbm %s3092_s30, %s2092_s21 }
 0x5e0   : > { %v1664_v45 = vsel %vm623_vm1, %v1661_v44, 0.0 }
 0x5e1   : > { %1665 = vadd.xlane.f32.xlu0 %v1664_v45 }
 0x66a   : > { %v1666_v46 = vpop.xlane.xlu0 %1665 }
 0x66b   : > { %v1668_v47 = vmul.f32 0.03125, %v1666_v46 }
 0x66d   : > { %v1669_v48 = vsub.f32 %v1661_v44, %v1668_v47 }
 0x66f   : > { %v1670_v49 = vmul.f32 %v1669_v48, %v1669_v48 }
 0x671   : > { %v1671_v50 = vsel %vm623_vm1, %v1670_v49, 0.0 }
 0x672   : > { %1672 = vadd.xlane.f32.xlu1 %v1671_v50 }
 0x6fb   : > { %v1673_v54 = vpop.xlane.xlu1 %1672 }
 0x6fc   : > { %v1674_v55 = vmul.f32 0.03125, %v1673_v54 }
 0x6fe   : > { %v1675_v56 = vadd.f32 1e-12, %v1674_v55 }
 0x700   : > { %2369 = vrsqrt.f32 %v1675_v56  ;;  %vm1678_vm6 = vcmp.eq.f32.partialorder %v1675_v56, inf  ;;  %v1681_v59 = vand.u32 2147483648, %v1675_v56  ;;  %vm1680_vm7 = vcmp.eq.f32.partialorder %v1675_v56, 0.0 }
 0x70d   : > { %v2370_v57 = vpop.eup %2369 }
 0x70e   : > { %v1677_v58 = vmul.f32 %v2370_v57, %v1675_v56 }
 0x710   : > { %v1679_v60 = vsel %vm1678_vm6, %v1675_v56, %v1677_v58 }
 0x711   : > { %v1682_v61 = vsel %vm1680_vm7, %v1681_v59, %v1679_v60 }
 0x712   : > { %2371 = vrcp.f32 %v1682_v61 }
 0x71f   : > { %v2372_v62 = vpop.eup %2371 }
 0x720   : > { %v1685_v1 = vmul.f32 %v2372_v62, %v1669_v48  ;;  %v2089_v62 = vld [vmem:[%s3090_s7] ss:$0 sm:$0xff]  ;;  %s2561_s7 = smov [#allocation11]  }
 0x721   : > { %s2465_s19 = sshll.u32 %s2561_s7, 4  ;;  %s2466_s19 = int_to_ptr.vmem [resolvable:$false] %s2465_s19 }
 0x722   : > { %v1692_v3 = vmul.f32 %v2083_v63, %v1685_v1  ;;  %v2090_v1 = vld [vmem:[%s3091_s12] ss:$0 sm:$0xff]  ;;  %s2467_s0 = scalar_lea.vmem %s2466_s19, 256  ;;  %p2468_p2 = scmp.lt.s32.totalorder %s1955_s15, %s2466_s19 }
 0x723   : > { %p2469_p13 = scmp.lt.s32.totalorder %s2467_s0, %s2461_s16 }
 0x724   : > { %v2939_v4 = vadd.f32 %v2084_v2, %v1692_v3 }
 0x725   : > { %p2470_p0 = por %p2469_p13, %p2468_p2 }
 0x726   : > { %2238 = vmatmul.mubr.msk.f32.vlgmr.msra.gmra.mxu1 %vm623_vm1, %v2939_v4 }
 0x727   : > { %p2471_p5 = pnand %p2470_p0, %p2464_p11 }
 0x7e6   : > { %v1780_v15 = vpop.f32.mrf.mxu1 }
 0x7e7   : > { %v1781_v16 = vadd.f32 %v2085_v14, %v1780_v15 }
 0x7e8   : > { %v2239_v17 = vpop.f32.mrf.mxu1 }
 0x7e9   : > { %v1785_v18 = vmul.f32 0.70710677, %v1781_v16  ;;  %v1784_v40 = vmul.f32 0.5, %v1781_v16 }
 0x7eb   : > { %v1788_v19 = vand.u32 2147483647, %v1785_v18  ;;  %vm1786_vm8 = vcmp.ge.f32.partialorder %v1785_v18, 0.0 }
 0x7ec   : > { %v1787_v38 = vsel %vm1786_vm8, 1.0, %v2560_v37 }
 0x7ed   : > { %v1789_v20 = vmul.f32 0.3275911, %v1788_v19  ;;  %v1802_v22 = vsub.f32 0.0, %v1788_v19 }
 0x7ef   : > { %v1790_v21 = vadd.f32 1.0, %v1789_v20  ;;  %v1803_v23 = vmul.f32 %v1802_v22, %v1788_v19 }
 0x7f1   : > { %2373 = vrcp.f32 %v1790_v21  ;;  %v1804_v26 = vmul.f32 1.442695, %v1803_v23 }
 0x7f3   : > { %2375 = vpow2.f32 %v1804_v26 }
 0x7fe   : > { %v2374_v24 = vpop.eup %2373 }
 0x7ff   : > { %v1793_v25 = vmul.f32 1.0614054, %v2374_v24 }
 0x800   : > { %v2376_v34 = vpop.eup %2375 }
 0x801   : > { %v1794_v27 = vadd.f32 -1.4531521, %v1793_v25 }
 0x803   : > { %v1795_v0 = vmul.f32 %v2374_v24, %v1794_v27 }
 0x805   : > { %v1796_v28 = vadd.f32 1.4214138, %v1795_v0 }
 0x807   : > { %v1797_v29 = vmul.f32 %v2374_v24, %v1796_v28 }
 0x809   : > { %v1798_v30 = vadd.f32 -0.28449672, %v1797_v29 }
 0x80b   : > { %v1799_v31 = vmul.f32 %v2374_v24, %v1798_v30 }
 0x80d   : > { %v1800_v32 = vadd.f32 0.2548296, %v1799_v31 }
 0x80f   : > { %v1801_v33 = vmul.f32 %v2374_v24, %v1800_v32 }
 0x811   : > { %v1806_v35 = vmul.f32 %v2376_v34, %v1801_v33 }
 0x813   : > { %v1807_v36 = vsub.f32 1.0, %v1806_v35 }
 0x815   : > { %v1808_v39 = vmul.f32 %v1807_v36, %v1787_v38 }
 0x817   : > { %v1809_v41 = vadd.f32 1.0, %v1808_v39 }
 0x819   : > { %v1810_v42 = vmul.f32 %v1809_v41, %v1784_v40 }
 0x81b   : > { %2257 = vmatmul.mubr.msk.f32.vlgmr.msra.gmra.mxu0 %vm1826_vm9, %v1810_v42 }
 0x8db   : > { %v1896_v44 = vpop.f32.mrf.mxu0 }
 0x8dc   : > { %v1897_v45 = vadd.f32 %v2087_v43, %v1896_v44 }
 0x8dd   : > { %v2258_v46 = vpop.f32.mrf.mxu0 }
 0x8de   : > { %v1900_v47 = vadd.f32 %v1897_v45, %v2939_v4 }
 0x8e0   : > { %v1903_v48 = vsel %vm623_vm1, %v1900_v47, 0.0 }
 0x8e1   : > { %1904 = vadd.xlane.f32.xlu0 %v1903_v48 }
 0x96a   : > { %v1905_v49 = vpop.xlane.xlu0 %1904 }
 0x96b   : > { %v1906_v50 = vmul.f32 0.03125, %v1905_v49 }
 0x96d   : > { %v1907_v51 = vsub.f32 %v1900_v47, %v1906_v50 }
 0x96f   : > { %v1908_v52 = vmul.f32 %v1907_v51, %v1907_v51 }
 0x971   : > { %v1909_v53 = vsel %vm623_vm1, %v1908_v52, 0.0 }
 0x972   : > { %1910 = vadd.xlane.f32.xlu0 %v1909_v53 }
 0x9fb   : > { %v1911_v8 = vpop.xlane.xlu0 %1910 }
 0x9fc   : > { %v1912_v54 = vmul.f32 0.03125, %v1911_v8 }
 0x9fe   : > { %v1913_v55 = vadd.f32 1e-12, %v1912_v54 }
 0xa00   : > { %2377 = vrsqrt.f32 %v1913_v55  ;;  %vm1916_vm10 = vcmp.eq.f32.partialorder %v1913_v55, inf  ;;  %v1919_v58 = vand.u32 2147483648, %v1913_v55  ;;  %vm1918_vm11 = vcmp.eq.f32.partialorder %v1913_v55, 0.0 }
 0xa0d   : > { %v2378_v56 = vpop.eup %2377 }
 0xa0e   : > { %v1915_v57 = vmul.f32 %v2378_v56, %v1913_v55 }
 0xa10   : > { %v1917_v59 = vsel %vm1916_vm10, %v1913_v55, %v1915_v57 }
 0xa11   : > { %v1920_v60 = vsel %vm1918_vm11, %v1919_v58, %v1917_v59 }
 0xa12   : > { %2379 = vrcp.f32 %v1920_v60 }
 0xa1f   : > { %v2380_v61 = vpop.eup %2379 }
 0xa20   : > { %v1923_v63 = vmul.f32 %v2380_v61, %v1907_v51 }
 0xa22   : > { %v1930_v2 = vmul.f32 %v2089_v62, %v1923_v63 }
 0xa24   : > { %v1937_v3 = vadd.f32 %v2090_v1, %v1930_v2 }
 0xa26   : > { %1938 = vst.msk [vmem:[%s606_s28] sm:$0xff] %vm623_vm1, %v1937_v3 }
 0xa27   : > { %2474 = shalt.err (!%p2471_p5)
}
 0xa28   : > { %s2475_s17 = scalar_lea.hbm %s1952_s24, 128  ;;  %s2479_s12 = scalar_lea.hbm %s3092_s30, 256 }
 0xa29   : > { %p2476_p10 = scmp.ne.s32.totalorder %s1952_s24, %s2475_s17  ;;  %p2480_p6 = scmp.lt.s32.totalorder %s1952_s24, %s3092_s30 }
 0xa2a   : > { %p2481_p12 = scmp.lt.s32.totalorder %s2479_s12, %s2475_s17 }
 0xa2b   : > { %p2477_p1 = pnand %p2476_p10, %p2747_p7 }
 0xa2c   : > { %p2482_p3 = por %p2481_p12, %p2480_p6 }
 0xa2d   : > { %p2478_p4 = pneg %p2477_p1 }
 0xa2f   : > { %p2483_p8 = pnand %p2482_p3, %p2478_p4 }
 0xa31   : > { %2486 = shalt.err (!%p2483_p8)
}
 0xa32   : > { %2269 = dma.vmem_to_hbm [thread:$0]  (%p2747_p7), %s1955_s15, 128, %s1952_s24, %s1940_s23  }
 0xa33 PF: > { %s3093_s18 = sld [smem:[#allocation15_spill]]  ;;  %p3096_p11 = scmp.ge.s32.totalorder %s2545_s29, 2 }
 0xa34   : > { %s3094_s20 = sld [smem:[#allocation18_spill]] }
 0xa39   : > { %s1966_s16 = sand.u32 1, %s3093_s18  }
 0xa3a   : > { %p3095_p9 = scmp.ne.s32.totalorder %s3094_s20, 0  ;;  %s1967_s7 = scalar_lea.sflag [#allocation7], %s1966_s16 }
 0xa3c   : > { %p2283_p2 = pnand %p3096_p11, %p3095_p9 }
 0xa3e   : > { %p2284_p13 = pneg %p2283_p2 }
 0xa40   : > { %2520 = dma.done.wait (%p2284_p13), %s1967_s7, 128  }
 0xa41   : > { %2522 = vsyncadd (%p2284_p13), %s1967_s7, 4294967168  ;;  %s34_s29 = sadd.s32 1, %s2545_s29   ;;  %s3097_s27 = sld [smem:[#allocation17_spill]] }
 0xa42   : > { %p31_p0 = scmp.ge.s32.totalorder %s34_s29, 4   ;;  %s3098_s28 = sld [smem:[#allocation19_spill]] }
 0xa43   : > { %s3099_s24 = smov %s2529_s25  ;;  %s3100_s25 = smov %s2533_s26 }
 0xa44   : > { %s3101_s26 = smov %s2756_s22  ;;  %33 = sbr.rel (!%p31_p0) target bundleno = 17 (0x11), region = 146 }
 0xa49   :  { %1972 = vsyncpa [#allocation6], 1 }
 0xa4a   :  { %1974 = vsyncpa [#allocation6 + $0x1], 1 }
 0xa4b   :  { %1975 = vsyncpa [#allocation9], 1 }
 0xa4c   :  { %1976 = vsyncpa [#allocation7], 1 }
 0xa4d   :  { %1978 = vsyncpa [#allocation7 + $0x1], 1 }

// kernel: tpu_custom_call.1
= control target key start
LH: loop header
LB: loop body
LE: loop exit
PB: predicated region body
PF: predicated region fallthrough
CT: control target
= control target key end

     0   :  { %s3032_s0 = inlined_call_operand.hbm [shape: f32[2,8,32], index: 0, kind: input, shape index: {}]   ;;  %s3033_s1 = inlined_call_operand.vmem [shape: f32[32,32], index: 1, kind: input, shape index: {}]   ;;  %s3034_s2 = inlined_call_operand.vmem [shape: f32[1,32], index: 2, kind: input, shape index: {}]   ;;  %s3035_s3 = inlined_call_operand.vmem [shape: f32[32,32], index: 3, kind: input, shape index: {}]   ;;  %s3036_s4 = inlined_call_operand.vmem [shape: f32[1,32], index: 4, kind: input, shape index: {}]   ;;  %s3037_s5 = inlined_call_operand.vmem [shape: f32[32,32], index: 5, kind: input, shape index: {}]   ;;  %s3038_s6 = inlined_call_operand.vmem [shape: f32[1,32], index: 6, kind: input, shape index: {}]   ;;  %s3039_s7 = inlined_call_operand.hbm [shape: f32[32,32], index: 7, kind: input, shape index: {}]   ;;  %s3040_s8 = inlined_call_operand.vmem [shape: f32[1,32], index: 8, kind: input, shape index: {}]   ;;  %s3041_s9 = inlined_call_operand.vmem [shape: f32[1,32], index: 9, kind: input, shape index: {}]   ;;  %s3042_s10 = inlined_call_operand.vmem [shape: f32[1,32], index: 10, kind: input, shape index: {}]   ;;  %s3043_s11 = inlined_call_operand.hbm [shape: f32[32,64], index: 11, kind: input, shape index: {}]   ;;  %s3044_s12 = inlined_call_operand.vmem [shape: f32[1,64], index: 12, kind: input, shape index: {}]   ;;  %s3045_s13 = inlined_call_operand.vmem [shape: f32[64,32], index: 13, kind: input, shape index: {}]   ;;  %s3046_s14 = inlined_call_operand.vmem [shape: f32[1,32], index: 14, kind: input, shape index: {}]   ;;  %s3047_s15 = inlined_call_operand.vmem [shape: f32[1,32], index: 15, kind: input, shape index: {}]   ;;  %s3048_s16 = inlined_call_operand.vmem [shape: f32[1,32], index: 16, kind: input, shape index: {}]   ;;  %s3049_s17 = inlined_call_operand.hbm [shape: f32[2,8,32], index: 17, kind: output, shape index: {}]  }
   0x1   :  { %3059 = sst [smem:[#allocation20_spill]] %s3032_s0 }
   0x2   :  { %3060 = sst [smem:[#allocation21_spill]] %s3033_s1 }
   0x3   :  { %3061 = sst [smem:[#allocation22_spill]] %s3039_s7 }
   0x4   :  { %3062 = sst [smem:[#allocation23_spill]] %s3043_s11 }
   0x5   :  { %3063 = sst [smem:[#allocation24_spill]] %s3044_s12 }
   0x6   :  { %3064 = sst [smem:[#allocation25_spill]] %s3046_s14 }
   0x7   :  { %3065 = sst [smem:[#allocation26_spill]] %s3047_s15 }
   0x8   :  { %3066 = sst [smem:[#allocation27_spill]] %s3048_s16 }
   0x9   :  { %3067 = sst [smem:[#allocation28_spill]] %s3049_s17 }
   0xa   :  { %22 = vsyncpa [#allocation6], 0 }
   0xb   :  { %24 = vsyncpa [#allocation6 + $0x1], 0 }
   0xc   :  { %25 = vsyncpa [#allocation9], 0 }
   0xd   :  { %26 = vsyncpa [#allocation7], 0 }
   0xe   :  { %28 = vsyncpa [#allocation7 + $0x1], 0  ;;  %s2652_s24 = smov 0   ;;  %s2654_s25 = smov 0  }
   0xf   :  { %s2656_s26 = smov 0   ;;  %s2658_s27 = smov 0  }
  0x10   :  { %s2660_s28 = smov 0   ;;  %s2662_s29 = smov 0  }
  0x11 LB: > { %3068 = sst [smem:[#allocation15_spill]] %s2525_s24  ;;  %s2054_s0 = sadd.s32 4294967295, %s2545_s29   ;;  %s2545_s29 = sphi %s2662_s29, %s34_s29   ;;  %s2541_s28 = sphi %s2660_s28, %s3098_s28   ;;  %s2537_s27 = sphi %s2658_s27, %s3097_s27   ;;  %s2533_s26 = sphi %s2656_s26, %s3101_s26   ;;  %s2529_s25 = sphi %s2654_s25, %s3100_s25   ;;  %s2525_s24 = sphi %s2652_s24, %s3099_s24  }
  0x12   : > { %3069 = sst [smem:[#allocation16_spill]] %s2537_s27  ;;  %s2055_s30 = sadd.s32 4294967294, %s2545_s29  }
  0x13   : > { %3070 = sst [smem:[#allocation17_spill]] %s2541_s28  ;;  %p66_p0 = scmp.ne.s32.totalorder %s2529_s25, %s2525_s24 }
  0x14   : > { %p2686_p1 = scmp.eq.s32.totalorder %s2054_s0, 0  ;;  %p2690_p2 = scmp.eq.s32.totalorder %s2054_s0, 1 }
  0x15   : > { %p434_p3 = scmp.eq.s32.totalorder %s2055_s30, 1  ;;  %p2056_p5 = scmp.ge.s32.totalorder %s2545_s29, 1 }
  0x16   : > { %s3071_s18 = scalar_select %p2686_p1, 1, 0 }
  0x17   : > { %p2696_p4 = por %p2686_p1, %p66_p0  ;;  %p2701_p6 = por %p434_p3, %p66_p0 }
  0x18   : > { %p441_p7 = scmp.lt.s32.totalorder %s2545_s29, 3  ;;  %s2547_s22 = smov [#allocation8]  }
  0x19   : > { %s3073_s1 = scalar_select %p2696_p4, 1, 0 }
  0x1a   : > { %s3074_s20 = scalar_select %p2701_p6, 1, 0 }
  0x1b   : > { %p2706_p8 = pnand %p2056_p5, %p441_p7  ;;  %s471_s23 = sshll.u32 %s2547_s22, 4  ;;  %s472_s23 = int_to_ptr.vmem [resolvable:$true] %s471_s23 }
  0x1c   : > { %3075 = sst [smem:[#allocation18_spill]] %s3074_s20  ;;  %s2548_s30 = smov [#allocation10]  }
  0x1d   : > { %p2271_p9 = pneg %p2706_p8  ;;  %s493_s20 = sshll.u32 %s2548_s30, 4  ;;  %s494_s20 = int_to_ptr.vmem [resolvable:$true] %s493_s20 }
  0x1e   : > { %s2392_s24 = scalar_lea.vmem %s472_s23, 512  ;;  %p2400_p5 = scmp.lt.s32.totalorder %s472_s23, %s472_s23 }
  0x1f   : > { %p2715_p11 = pnand %p2271_p9, %p2686_p1  ;;  %p2393_p13 = scmp.ne.s32.totalorder %s472_s23, %s2392_s24 }
  0x20   : > { %p2401_p7 = scmp.lt.s32.totalorder %s2392_s24, %s2392_s24 }
  0x21   : > { %p2383_p12 = pneg %p2715_p11 }
  0x22   : > { %p2402_p10 = por %p2401_p7, %p2400_p5 }
  0x23   : > { %p2395_p0 = pnand %p2393_p13, %p2383_p12 }
  0x25   : > { %p2396_p3 = pneg %p2395_p0 }
  0x27   : > { %p2403_p9 = pnand %p2402_p10, %p2396_p3 }
  0x29   : > { %2406 = shalt.err (!%p2403_p9)
}
  0x2a   : > { %s2549_s22 = smov 128   ;;  %s2550_s17 = smov 8  }
  0x2b   : > { %s3078_s7 = sld [smem:[#allocation22_spill]]  ;;  %s2418_s15 = scalar_lea.vmem %s494_s20, 512 }
  0x2c   : > { %p2419_p6 = scmp.ne.s32.totalorder %s494_s20, %s2418_s15  ;;  %p2426_p1 = scmp.lt.s32.totalorder %s494_s20, %s494_s20 }
  0x2d   : > { %p2427_p4 = scmp.lt.s32.totalorder %s2418_s15, %s2418_s15 }
  0x2e   : > { %p2421_p13 = pnand %p2419_p6, %p2383_p12 }
  0x2f   : > { %p2428_p5 = por %p2427_p4, %p2426_p1 }
  0x30   : > { %p2422_p0 = pneg %p2421_p13 }
  0x31   : > { %2274 = dma.hbm_to_vmem [thread:$0]  (!%p2715_p11), %s3078_s7, 512, %s472_s23, [#allocation9], %s2549_s22, %s2549_s22, %s2550_s17  }
  0x32   : > { %p2429_p10 = pnand %p2428_p5, %p2422_p0 }
  0x34   : > { %2432 = shalt.err (!%p2429_p10)
}
  0x35   : > { %s3079_s11 = sld [smem:[#allocation23_spill]]  ;;  %s46_s15 = sadd.s32 1, %s2541_s28 }
  0x36   : > { %s53_s16 = sadd.s32 1, %s2533_s26  ;;  %p48_p1 = scmp.ge.s32.totalorder %s46_s15, 2 }
  0x37   : > { %p60_p4 = scmp.ne.s32.totalorder %s2533_s26, %s2529_s25  ;;  %p61_p6 = scmp.eq.s32.totalorder %s2545_s29, 0 }
  0x38   : > { %p2288_p12 = scmp.lt.s32.totalorder %s2545_s29, 2  ;;  %s3103_s15 = smov (%p48_p1, %s46_s15), 0 }
  0x39   : > { %3080 = sst [smem:[#allocation19_spill]] %s3103_s15  ;;  %p62_p3 = por %p61_p6, %p60_p4 }
  0x3a   : > { %p2747_p7 = por %p2690_p2, %p60_p4  ;;  %s50_s23 = ssub.s32 %s2541_s28, %s3103_s15 }
  0x3b   : > { %2277 = dma.hbm_to_vmem [thread:$0]  (!%p2715_p11), %s3079_s11, 512, %s494_s20, [#allocation9], %s2549_s22, %s2549_s22, %s2550_s17  }
  0x3c   : > { %s522_s0 = sand.u32 1, %s2533_s26   ;;  %p51_p9 = scmp.eq.s32.totalorder %s50_s23, 0 }
  0x3d   : > { %s2060_s17 = sshll.u32 %s522_s0, 3  ;;  %s2061_s20 = sshll.u32 %s2541_s28, 7 }
  0x3e   : > { %s2756_s22 = scalar_select %p51_p9, %s2533_s26, %s53_s16  }
  0x3f   : > { %s3082_s7 = sld [smem:[#allocation20_spill]]  ;;  %s526_s14 = scalar_lea.vmem [#allocation5], %s2060_s17 }
  0x40   : > { %s533_s12 = sshll.u32 %s526_s14, 4  ;;  %p2763_p11 = pnand %p2288_p12, %p62_p3  ;;  %s534_s12 = int_to_ptr.vmem [resolvable:$true] %s533_s12 }
  0x41   : > { %s523_s15 = scalar_lea.sflag [#allocation6], %s522_s0  ;;  %s2446_s23 = scalar_lea.vmem %s534_s12, 128 }
  0x42   : > { %p2435_p2 = pneg %p2763_p11  ;;  %p2447_p13 = scmp.ne.s32.totalorder %s534_s12, %s2446_s23 }
  0x43   : > { %s2551_s16 = smov [#allocation5]  }
  0x44   : > { %p2449_p0 = pnand %p2447_p13, %p2435_p2  ;;  %s2451_s28 = sshll.u32 %s2551_s16, 4  ;;  %s2452_s28 = int_to_ptr.vmem [resolvable:$false] %s2451_s28 }
  0x45   : > { %s531_s11 = scalar_lea.hbm %s3082_s7, %s2061_s20  ;;  %s2453_s7 = scalar_lea.vmem %s2452_s28, 256 }
  0x46   : > { %p2450_p5 = pneg %p2449_p0  ;;  %p2454_p10 = scmp.lt.s32.totalorder %s534_s12, %s2452_s28 }
  0x47   : > { %p2455_p1 = scmp.lt.s32.totalorder %s2453_s7, %s2446_s23 }
  0x49   : > { %p2456_p4 = por %p2455_p1, %p2454_p10 }
  0x4b   : > { %p2457_p6 = pnand %p2456_p4, %p2450_p5 }
  0x4d   : > { %2460 = shalt.err (!%p2457_p6)
}
  0x4e   : > { %2281 = dma.hbm_to_vmem [thread:$0]  (!%p2763_p11), %s531_s11, 128, %s534_s12, %s523_s15  }
  0x4f   : > { %542 = sbr.rel (%p2706_p8) target bundleno = 2611 (0xa33), region = 88  ;;  %s2774_s14 = sand.u32 (!%p2706_p8), 1, %s2529_s25  }
  0x50   : > { %s2063_s0 = sshll.u32 (!%p2706_p8), %s2774_s14, 3  ;;  %s545_s17 = scalar_lea.sflag (!%p2706_p8), [#allocation6], %s2774_s14 }
  0x51   : > { %s548_s28 = scalar_lea.vmem (!%p2706_p8), [#allocation5], %s2063_s0  ;;  %p3084_p12 = scmp.ne.s32.totalorder (!%p2706_p8), %s3073_s1, 0 }
  0x54   : > { %2512 = dma.done.wait (%p3084_p12), %s545_s17, 128  }
  0x55   : > { %2514 = vsyncadd (%p3084_p12), %s545_s17, 4294967168  ;;  %p3085_p3 = scmp.ne.s32.totalorder %s3071_s18, 0 }
  0x57   : > { %2516 = dma.done.wait (%p3085_p3), [#allocation9], 1024  }
  0x58   : > { %2518 = vsyncadd (%p3085_p3), [#allocation9], 4294966272  ;;  %v2552_v0 = vmov 0.0   ;;  %vm2553_vm0 = vmmov 0   ;;  %s3086_s1 = sld [smem:[#allocation21_spill]]  ;;  %v615_v3 = vld [vmem:[%s3035_s3 + $0x18] sm:$0xff] }
  0x59   : > { %2167 = vmatprep.subr.mxu0 %v2552_v0  ;;  %2175 = vmatprep.mubr.msk.f32.mxu0 %vm2553_vm0, %v2552_v0  ;;  %v614_v5 = vld [vmem:[%s3035_s3 + $0x10] sm:$0xff]  ;;  %v613_v6 = vld [vmem:[%s3035_s3 + $0x8] sm:$0xff]  ;;  %vm623_vm1 = vcmask 261120   ;;  %v612_v9 = vld [vmem:[%s3035_s3] sm:$0xff]  ;;  %s2554_s30 = smov 104   ;;  %s2555_s24 = smov 120  }
  0x5a   : > { %2145 = vmatprep.subr.mxu1 %v2552_v0  ;;  %2153 = vmatprep.mubr.msk.f32.mxu1 %vm2553_vm0, %v2552_v0  ;;  %v2818_v8 = vld [vmem:[%s548_s28] sm:$0xff]  ;;  %v2071_v11 = vld [vmem:[%s3034_s2] ss:$0 sm:$0xff]  ;;  %s2556_s19 = smov 112   ;;  %v698_v21 = vld [vmem:[%s3037_s5 + $0x8] sm:$0xff]  ;;  %vm810_vm2 = vcmask 64512  }
  0x5b   : > { %2146 = vmatpush3.msra.mxu1 %v615_v3  ;;  %v700_v10 = vld [vmem:[%s3037_s5 + $0x18] sm:$0xff]  ;;  %v2067_v18 = vld [vmem:[%s3036_s4] ss:$0 sm:$0xff]  ;;  %v699_v19 = vld [vmem:[%s3037_s5 + $0x10] sm:$0xff]  ;;  %s2557_s20 = smov 8   ;;  %vm1234_vm3 = vcmask 130112  }
  0x5c   : > { %2147 = vmatprep.subr.mxu1 %v2552_v0  ;;  %v697_v22 = vld [vmem:[%s3037_s5] sm:$0xff]  ;;  %vm1404_vm4 = vcmask 195712   ;;  %vm1574_vm5 = vcmask 261312   ;;  %s3087_s18 = sld [smem:[#allocation24_spill]]  ;;  %vm1826_vm9 = vcmask 523264   ;;  %s606_s28 = scalar_lea.vmem [#allocation11], %s2063_s0 }
  0x5d   : > { %2148 = vmatpush3.msra.mxu1 %v614_v5  ;;  %v2069_v34 = vld [vmem:[%s3038_s6] ss:$0 sm:$0xff]  ;;  %s3090_s7 = sld [smem:[#allocation26_spill]]  ;;  %s1954_s15 = sshll.u32 %s606_s28, 4  ;;  %s1955_s15 = int_to_ptr.vmem [resolvable:$true] %s1954_s15 }
  0x5e   : > { %v822_v1 = vld [vmem:[%s3086_s1 + $0x18] sm:$0xff]  ;;  %v821_v2 = vld [vmem:[%s3086_s1 + $0x10] sm:$0xff]  ;;  %v820_v4 = vld [vmem:[%s3086_s1 + $0x8] sm:$0xff]  ;;  %2149 = vmatprep.subr.mxu1 %v2552_v0  ;;  %s3091_s12 = sld [smem:[#allocation27_spill]]  ;;  %s1940_s23 = scalar_lea.sflag [#allocation7], %s2774_s14 }
  0x5f   : > { %2168 = vmatpush3.msra.mxu0 %v822_v1  ;;  %v819_v7 = vld [vmem:[%s3086_s1] sm:$0xff]  ;;  %2150 = vmatpush3.msra.mxu1 %v613_v6  ;;  %s2461_s16 = scalar_lea.vmem %s1955_s15, 128 }
  0x60   : > { %2169 = vmatprep.subr.mxu0 %v2552_v0  ;;  %2151 = vmatprep.subr.mxu1 %v2552_v0  ;;  %p2462_p8 = scmp.ne.s32.totalorder %s1955_s15, %s2461_s16 }
  0x61   : > { %2170 = vmatpush3.msra.mxu0 %v821_v2  ;;  %2152 = vmatpush3.msra.mxu1 %v612_v9 }
  0x62   : > { %2171 = vmatprep.subr.mxu0 %v2552_v0  ;;  %2154 = vmatmul.mubr.msk.f32.vlgmr.msra.gmra.mxu1 %vm623_vm1, %v2818_v8  ;;  %p2463_p9 = pnand %p2462_p8, %p2747_p7 }
  0x63   : > { %2172 = vmatpush3.msra.mxu0 %v820_v4  ;;  %2156 = vmatprep.subr.mxu1 %v2552_v0 }
  0x64   : > { %2173 = vmatprep.subr.mxu0 %v2552_v0  ;;  %2164 = vmatprep.mubr.msk.f32.mxu1 %vm2553_vm0, %v2552_v0  ;;  %p2464_p11 = pneg %p2463_p9 }
  0x65   : > { %2174 = vmatpush3.msra.mxu0 %v819_v7  ;;  %2157 = vmatpush3.msra.mxu1 %v700_v10 }
  0x66   : > { %2176 = vmatmul.mubr.msk.f32.vlgmr.msra.gmra.mxu0 %vm623_vm1, %v2818_v8  ;;  %2188 = vmatprep.subr.mxu0 %v2552_v0 }
  0x67   : > { %2190 = vmatprep.mubr.msk.f32.mxu0 %vm2553_vm0, %v2552_v0  ;;  %2158 = vmatprep.subr.mxu1 %v2552_v0 }
  0x68   : > { %2159 = vmatpush3.msra.mxu1 %v699_v19 }
  0x69   : > { %2160 = vmatprep.subr.mxu1 %v2552_v0 }
  0x6a   : > { %2161 = vmatpush3.msra.mxu1 %v698_v21 }
  0x6b   : > { %2162 = vmatprep.subr.mxu1 %v2552_v0 }
  0x6c   : > { %2163 = vmatpush3.msra.mxu1 %v697_v22 }
  0x6d   : > { %2165 = vmatmul.mubr.msk.f32.vlgmr.msra.gmra.mxu1 %vm623_vm1, %v2818_v8  ;;  %2178 = vmatprep.subr.mxu1 %v2552_v0 }
  0x6e   : > { %2180 = vmatprep.mubr.msk.f32.mxu1 %vm2553_vm0, %v2552_v0 }
 0x122   : > { %v693_v14 = vpop.f32.mrf.mxu1 }
 0x123   : > { %v694_v20 = vadd.f32 %v2067_v18, %v693_v14 }
 0x124   : > { %v2155_v17 = vpop.f32.mrf.mxu1 }
 0x126   : > { %v900_v12 = vpop.f32.mrf.mxu0 }
 0x127   : > { %v901_v13 = vadd.f32 %v2071_v11, %v900_v12 }
 0x128   : > { %v2177_v15 = vpop.f32.mrf.mxu0 }
 0x129   : > { %v904_v16 = vmul.f32 0.35355338, %v901_v13 }
 0x12b   : > { %1407 = vrot.lane.b32.xlu1 %v904_v16, %s2554_s30  ;;  %1067 = vrot.lane.b32.xlu0 %v904_v16, %s2555_s24 }
 0x12d   : > { %v774_v35 = vpop.f32.mrf.mxu1 }
 0x12e   : > { %v775_v36 = vadd.f32 %v2069_v34, %v774_v35 }
 0x12f   : > { %1237 = vrot.lane.b32.xlu0 %v904_v16, %s2556_s19  ;;  %v2166_v37 = vpop.f32.mrf.mxu1 }
 0x130   : > { %815 = vst.msk [vmem:[#allocation3] sm:$0xff] %vm623_vm1, %v775_v36 }
 0x137   : > { %v991_v38 = vld [vmem:[#allocation3] sm:$0xff] }
 0x154   : > { %778 = vxpose.xlu1.b32.start.end [1/1] (short) (narrow) %v694_v20, 32 }
 0x19d   : > { %v1408_v23 = vpop.permute.xlu1 %1407  ;;  %v1068_v28 = vpop.permute.xlu0 %1067 }
 0x1a1   : > { %v1238_v32 = vpop.permute.xlu0 %1237 }
 0x1d0   : > { %v794_v24 = vpop.trf.xlu1 }
 0x1d1   : > { %811 = vst.msk [vmem:[#allocation2] sm:$0xff] %vm810_vm2, %v794_v24 }
 0x1d4   : > { %v795_v25 = vpop.trf.xlu1 }
 0x1d5   : > { %812 = vst.msk [vmem:[#allocation2 + $0x8] sm:$0xff] %vm810_vm2, %v795_v25  ;;  %v1580_v25 = vld [vmem:[#allocation8 + $0x18] sm:$0xff] }
 0x1d8   : > { %v796_v26 = vpop.trf.xlu1  ;;  %v905_v27 = vld [vmem:[#allocation2] sm:$0xff] }
 0x1d9   : > { %813 = vst.msk [vmem:[#allocation2 + $0x10] sm:$0xff] %vm810_vm2, %v796_v26  ;;  %2179 = vmatpush3.msra.mxu1 %v905_v27  ;;  %v1579_v26 = vld [vmem:[#allocation8 + $0x10] sm:$0xff] }
 0x1da   : > { %2181 = vmatmul.mubr.msk.f32.vlgmr.msra.gmra.mxu1 %vm810_vm2, %v904_v16  ;;  %2183 = vmatprep.subr.mxu1 %v2552_v0 }
 0x1db   : > { %2185 = vmatprep.mubr.msk.f32.mxu1 %vm2553_vm0, %v2552_v0  ;;  %2184 = vmatpush3.msra.mxu1 %v991_v38 }
 0x1dc   : > { %v797_v29 = vpop.trf.xlu1  ;;  %v1066_v30 = vld [vmem:[#allocation2 + $0x8] sm:$0xff]  ;;  %2193 = vmatprep.subr.mxu1 %v2552_v0 }
 0x1dd   : > { %814 = vst.msk [vmem:[#allocation2 + $0x18] sm:$0xff] %vm810_vm2, %v797_v29  ;;  %2189 = vmatpush3.msra.mxu0 %v1066_v30  ;;  %v1577_v30 = vld [vmem:[#allocation8] sm:$0xff] }
 0x1de   : > { %2191 = vmatmul.mubr.msk.f32.vlgmr.msra.gmra.mxu0 %vm810_vm2, %v1068_v28  ;;  %2198 = vmatprep.subr.mxu0 %v2552_v0  ;;  %v1578_v28 = vld [vmem:[#allocation8 + $0x8] sm:$0xff] }
 0x1df   : > { %2200 = vmatprep.mubr.msk.f32.mxu0 %vm2553_vm0, %v2552_v0 }
 0x1e0   : > { %v1236_v31 = vld [vmem:[#allocation2 + $0x10] sm:$0xff] }
 0x1e1   : > { %2199 = vmatpush3.msra.mxu0 %v1236_v31 }
 0x1e2   : > { %2201 = vmatmul.mubr.msk.f32.vlgmr.msra.gmra.mxu0 %vm810_vm2, %v1238_v32  ;;  %2208 = vmatprep.subr.mxu0 %v2552_v0 }
 0x1e3   : > { %2210 = vmatprep.mubr.msk.f32.mxu0 %vm2553_vm0, %v2552_v0 }
 0x1e4   : > { %v1406_v33 = vld [vmem:[#allocation2 + $0x18] sm:$0xff] }
 0x1e5   : > { %2209 = vmatpush3.msra.mxu0 %v1406_v33 }
 0x1e6   : > { %2211 = vmatmul.mubr.msk.f32.vlgmr.msra.gmra.mxu0 %vm810_vm2, %v1408_v23  ;;  %2218 = vmatprep.subr.mxu0 %v2552_v0 }
 0x1e7   : > { %2226 = vmatprep.mubr.msk.f32.mxu0 %vm2553_vm0, %v2552_v0  ;;  %2219 = vmatpush3.msra.mxu0 %v1580_v25 }
 0x1e8   : > { %2220 = vmatprep.subr.mxu0 %v2552_v0 }
 0x1e9   : > { %2221 = vmatpush3.msra.mxu0 %v1579_v26 }
 0x1ea   : > { %2222 = vmatprep.subr.mxu0 %v2552_v0 }
 0x1eb   : > { %2223 = vmatpush3.msra.mxu0 %v1578_v28 }
 0x1ec   : > { %2224 = vmatprep.subr.mxu0 %v2552_v0 }
 0x1ed   : > { %2225 = vmatpush3.msra.mxu0 %v1577_v30 }
 0x1ee   : > { %2240 = vmatprep.subr.mxu0 %v2552_v0 }
 0x29a   : > { %v976_v39 = vpop.f32.mrf.mxu1 }
 0x29b   : > { %v980_v40 = vsel %vm810_vm2, %v976_v39, -inf }
 0x29c   : > { %981 = vmax.xlane.f32.xlu0 %v980_v40  ;;  %v2182_v41 = vpop.f32.mrf.mxu1  ;;  %v2081_v40 = vld [vmem:[%s3040_s8] ss:$0 sm:$0xff] }
 0x29e   : > { %v1137_v42 = vpop.f32.mrf.mxu0 }
 0x29f   : > { %v1141_v43 = vsel %vm810_vm2, %v1137_v42, -inf }
 0x2a0   : > { %v2192_v44 = vpop.f32.mrf.mxu0  ;;  %1142 = vmax.xlane.f32.xlu0 %v1141_v43 }
 0x2a2   : > { %v1307_v45 = vpop.f32.mrf.mxu0 }
 0x2a3   : > { %v1311_v46 = vsel %vm810_vm2, %v1307_v45, -inf }
 0x2a4   : > { %v2202_v47 = vpop.f32.mrf.mxu0  ;;  %1312 = vmax.xlane.f32.xlu0 %v1311_v46 }
 0x2a6   : > { %v1477_v48 = vpop.f32.mrf.mxu0 }
 0x2a7   : > { %v1481_v49 = vsel %vm810_vm2, %v1477_v48, -inf }
 0x2a8   : > { %1482 = vmax.xlane.f32.xlu1 %v1481_v49  ;;  %v2212_v50 = vpop.f32.mrf.mxu0 }
 0x2ba   : > { %1154 = vrot.lane.b32.xlu0 %v991_v38, %s2555_s24  ;;  %s2559_s24 = smov 24  }
 0x2be   : > { %1324 = vrot.lane.b32.xlu0 %v991_v38, %s2556_s19  ;;  %s3089_s19 = sld [smem:[#allocation16_spill]] }
 0x2c4   : > { %s2092_s21 = sshll.u32 %s3089_s19, 7 }
 0x325   : > { %v982_v51 = vpop.xlane.xlu0 %981 }
 0x326   : > { %v983_v52 = vsub.f32 %v976_v39, %v982_v51  ;;  %v1703_v51 = vld [vmem:[#allocation10 + $0x18] sm:$0xff] }
 0x328   : > { %v984_v53 = vmul.f32 1.442695, %v983_v52  ;;  %v1702_v52 = vld [vmem:[#allocation10 + $0x10] sm:$0xff] }
 0x329   : > { %v1143_v54 = vpop.xlane.xlu0 %1142 }
 0x32a   : > { %2353 = vpow2.f32 %v984_v53  ;;  %v1144_v55 = vsub.f32 %v1137_v42, %v1143_v54  ;;  %v1701_v53 = vld [vmem:[#allocation10 + $0x8] sm:$0xff] }
 0x32c   : > { %v1145_v56 = vmul.f32 1.442695, %v1144_v55 }
 0x32d   : > { %v1313_v57 = vpop.xlane.xlu0 %1312 }
 0x32e   : > { %2355 = vpow2.f32 %v1145_v56  ;;  %v1314_v58 = vsub.f32 %v1307_v45, %v1313_v57 }
 0x330   : > { %v1315_v59 = vmul.f32 1.442695, %v1314_v58 }
 0x331   : > { %v1483_v60 = vpop.xlane.xlu1 %1482  ;;  %v1155_v9 = vpop.permute.xlu0 %1154 }
 0x332   : > { %2357 = vpow2.f32 %v1315_v59  ;;  %v1484_v61 = vsub.f32 %v1477_v48, %v1483_v60 }
 0x334   : > { %v1485_v62 = vmul.f32 1.442695, %v1484_v61 }
 0x335   : > { %v1325_v10 = vpop.permute.xlu0 %1324 }
 0x336   : > { %2359 = vpow2.f32 %v1485_v62 }
 0x337   : > { %v2354_v63 = vpop.eup %2353 }
 0x338   : > { %v986_v1 = vsel %vm810_vm2, %v2354_v63, 0.0 }
 0x339   : > { %987 = vadd.xlane.f32.xlu0 %v986_v1 }
 0x33b   : > { %v2356_v2 = vpop.eup %2355 }
 0x33c   : > { %v1147_v3 = vsel %vm810_vm2, %v2356_v2, 0.0 }
 0x33d   : > { %1148 = vadd.xlane.f32.xlu0 %v1147_v3 }
 0x33f   : > { %v2358_v4 = vpop.eup %2357 }
 0x340   : > { %v1317_v5 = vsel %vm810_vm2, %v2358_v4, 0.0 }
 0x341   : > { %1318 = vadd.xlane.f32.xlu0 %v1317_v5  ;;  %v1818_v5 = vld [vmem:[%s3045_s13 + $0x38] sm:$0xff] }
 0x343   : > { %v2360_v6 = vpop.eup %2359 }
 0x344   : > { %v1487_v7 = vsel %vm810_vm2, %v2360_v6, 0.0 }
 0x345   : > { %1488 = vadd.xlane.f32.xlu0 %v1487_v7  ;;  %v1816_v7 = vld [vmem:[%s3045_s13 + $0x28] sm:$0xff] }
 0x35b   : > { %1494 = vrot.lane.b32.xlu0 %v991_v38, %s2554_s30  ;;  %s2558_s30 = smov 16  }
 0x3c2   : > { %v988_v11 = vpop.xlane.xlu0 %987 }
 0x3c3   : > { %2361 = vrcp.f32 %v988_v11  ;;  %v1813_v11 = vld [vmem:[%s3045_s13 + $0x10] sm:$0xff] }
 0x3c6   : > { %v1149_v12 = vpop.xlane.xlu0 %1148 }
 0x3c7   : > { %2363 = vrcp.f32 %v1149_v12  ;;  %v1812_v12 = vld [vmem:[%s3045_s13 + $0x8] sm:$0xff] }
 0x3ca   : > { %v1319_v13 = vpop.xlane.xlu0 %1318 }
 0x3cb   : > { %2365 = vrcp.f32 %v1319_v13  ;;  %v1811_v13 = vld [vmem:[%s3045_s13] sm:$0xff] }
 0x3ce   : > { %v1489_v14 = vpop.xlane.xlu0 %1488 }
 0x3cf   : > { %2367 = vrcp.f32 %v1489_v14  ;;  %v2085_v14 = vld [vmem:[%s3087_s18] ss:$0 sm:$0xff] }
 0x3d0   : > { %v2362_v15 = vpop.eup %2361 }
 0x3d1   : > { %v990_v16 = vmul.f32 %v2362_v15, %v2354_v63  ;;  %v2083_v63 = vld [vmem:[%s3041_s9] ss:$0 sm:$0xff] }
 0x3d2   : > { %v1495_v21 = vpop.permute.xlu0 %1494 }
 0x3d3   : > { %2186 = vmatmul.mubr.msk.f32.vlgmr.msra.gmra.mxu1 %vm810_vm2, %v990_v16 }
 0x3d4   : > { %v2364_v17 = vpop.eup %2363  ;;  %2194 = vmatpush3.msra.mxu1 %v1155_v9  ;;  %2195 = vmatprep.mubr.msk.f32.mxu1 %vm2553_vm0, %v2552_v0  ;;  %v1815_v9 = vld [vmem:[%s3045_s13 + $0x20] sm:$0xff] }
 0x3d5   : > { %2203 = vmatprep.subr.mxu1 %v2552_v0  ;;  %v1151_v18 = vmul.f32 %v2364_v17, %v2356_v2  ;;  %v2084_v2 = vld [vmem:[%s3042_s10] ss:$0 sm:$0xff] }
 0x3d7   : > { %2196 = vmatmul.mubr.msk.f32.vlgmr.msra.gmra.mxu1 %vm810_vm2, %v1151_v18 }
 0x3d8   : > { %v2366_v19 = vpop.eup %2365  ;;  %2204 = vmatpush3.msra.mxu1 %v1325_v10  ;;  %2205 = vmatprep.mubr.msk.f32.mxu1 %vm2553_vm0, %v2552_v0  ;;  %v1814_v10 = vld [vmem:[%s3045_s13 + $0x18] sm:$0xff] }
 0x3d9   : > { %2213 = vmatprep.subr.mxu1 %v2552_v0  ;;  %v1321_v20 = vmul.f32 %v2366_v19, %v2358_v4 }
 0x3db   : > { %2206 = vmatmul.mubr.msk.f32.vlgmr.msra.gmra.mxu1 %vm810_vm2, %v1321_v20 }
 0x3dc   : > { %v2368_v22 = vpop.eup %2367  ;;  %2214 = vmatpush3.msra.mxu1 %v1495_v21  ;;  %2215 = vmatprep.mubr.msk.f32.mxu1 %vm2553_vm0, %v2552_v0 }
 0x3dd   : > { %v1491_v23 = vmul.f32 %v2368_v22, %v2360_v6  ;;  %2229 = vmatprep.subr.mxu1 %v2552_v0  ;;  %v1817_v6 = vld [vmem:[%s3045_s13 + $0x30] sm:$0xff] }
 0x3df   : > { %2216 = vmatmul.mubr.msk.f32.vlgmr.msra.gmra.mxu1 %vm810_vm2, %v1491_v23 }
 0x3e0   : > { %2237 = vmatprep.mubr.msk.f32.mxu1 %vm2553_vm0, %v2552_v0  ;;  %2230 = vmatpush3.msra.mxu1 %v1703_v51 }
 0x3e1   : > { %2231 = vmatprep.subr.mxu1 %v2552_v0 }
 0x3e2   : > { %2232 = vmatpush3.msra.mxu1 %v1702_v52 }
 0x3e3   : > { %2233 = vmatprep.subr.mxu1 %v2552_v0 }
 0x3e4   : > { %2234 = vmatpush3.msra.mxu1 %v1701_v53 }
 0x3e5   : > { %2235 = vmatprep.subr.mxu1 %v2552_v0 }
 0x493   : > { %v1061_v24 = vpop.f32.mrf.mxu1 }
 0x494   : > { %1065 = vst.msk [vmem:[#allocation4] sm:$0xff] %vm810_vm2, %v1061_v24 }
 0x495   : > { %v2187_v27 = vpop.f32.mrf.mxu1 }
 0x497   : > { %v1226_v29 = vpop.f32.mrf.mxu1 }
 0x498   : > { %1231 = vrot.lane.b32.xlu0 %v1226_v29, %s2557_s20 }
 0x499   : > { %v2197_v31 = vpop.f32.mrf.mxu1 }
 0x49b   : > { %v1396_v32 = vpop.f32.mrf.mxu1 }
 0x49c   : > { %1401 = vrot.lane.b32.xlu1 %v1396_v32, %s2558_s30  ;;  %s3092_s30 = sld [smem:[#allocation28_spill]] }
 0x49d   : > { %v2207_v33 = vpop.f32.mrf.mxu1 }
 0x49f   : > { %v1566_v34 = vpop.f32.mrf.mxu1 }
 0x4a0   : > { %1571 = vrot.lane.b32.xlu0 %v1566_v34, %s2559_s24  ;;  %s3088_s24 = sld [smem:[#allocation25_spill]] }
 0x4a1   : > { %v2217_v35 = vpop.f32.mrf.mxu1 }
 0x50a   : > { %v1232_v36 = vpop.permute.xlu0 %1231 }
 0x50b   : > { %1235 = vst.msk [vmem:[#allocation4] sm:$0xff] %vm1234_vm3, %v1232_v36 }
 0x50e   : > { %v1402_v37 = vpop.permute.xlu1 %1401 }
 0x50f   : > { %1405 = vst.msk [vmem:[#allocation4] sm:$0xff] %vm1404_vm4, %v1402_v37  ;;  %v2560_v37 = vmov -1.0  }
 0x512   : > { %v1572_v38 = vpop.permute.xlu0 %1571 }
 0x513   : > { %1575 = vst.msk [vmem:[#allocation4] sm:$0xff] %vm1574_vm5, %v1572_v38 }
 0x51a   : > { %v1576_v39 = vld [vmem:[#allocation4] sm:$0xff] }
 0x51b   : > { %2227 = vmatmul.mubr.msk.f32.vlgmr.msra.gmra.mxu0 %vm623_vm1, %v1576_v39 }
 0x51c   : > { %2256 = vmatprep.mubr.msk.f32.mxu0 %vm2553_vm0, %v2552_v0  ;;  %2241 = vmatpush3.msra.mxu0 %v1818_v5 }
 0x51d   : > { %2242 = vmatprep.subr.mxu0 %v2552_v0 }
 0x51e   : > { %2243 = vmatpush3.msra.mxu0 %v1817_v6 }
 0x51f   : > { %2244 = vmatprep.subr.mxu0 %v2552_v0 }
 0x520   : > { %2245 = vmatpush3.msra.mxu0 %v1816_v7 }
 0x521   : > { %2246 = vmatprep.subr.mxu0 %v2552_v0 }
 0x522   : > { %2247 = vmatpush3.msra.mxu0 %v1815_v9 }
 0x523   : > { %2248 = vmatprep.subr.mxu0 %v2552_v0 }
 0x524   : > { %2249 = vmatpush3.msra.mxu0 %v1814_v10 }
 0x525   : > { %2250 = vmatprep.subr.mxu0 %v2552_v0 }
 0x526   : > { %2251 = vmatpush3.msra.mxu0 %v1813_v11 }
 0x527   : > { %2252 = vmatprep.subr.mxu0 %v2552_v0 }
 0x528   : > { %2253 = vmatpush3.msra.mxu0 %v1812_v12 }
 0x529   : > { %2254 = vmatprep.subr.mxu0 %v2552_v0 }
 0x52a   : > { %2255 = vmatpush3.msra.mxu0 %v1811_v13 }
 0x5db   : > { %v1657_v41 = vpop.f32.mrf.mxu0 }
 0x5dc   : > { %v1658_v42 = vadd.f32 %v2081_v40, %v1657_v41 }
 0x5dd   : > { %v2228_v43 = vpop.f32.mrf.mxu0 }
 0x5de   : > { %v1661_v44 = vadd.f32 %v1658_v42, %v2818_v8  ;;  %v1700_v8 = vld [vmem:[#allocation10] sm:$0xff] }
 0x5df   : > { %2236 = vmatpush3.msra.mxu1 %v1700_v8  ;;  %v2087_v43 = vld [vmem:[%s3088_s24] ss:$0 sm:$0xff]  ;;  %s1952_s24 = scalar_lea.hbm %s3092_s30, %s2092_s21 }
 0x5e0   : > { %v1664_v45 = vsel %vm623_vm1, %v1661_v44, 0.0 }
 0x5e1   : > { %1665 = vadd.xlane.f32.xlu0 %v1664_v45 }
 0x66a   : > { %v1666_v46 = vpop.xlane.xlu0 %1665 }
 0x66b   : > { %v1668_v47 = vmul.f32 0.03125, %v1666_v46 }
 0x66d   : > { %v1669_v48 = vsub.f32 %v1661_v44, %v1668_v47 }
 0x66f   : > { %v1670_v49 = vmul.f32 %v1669_v48, %v1669_v48 }
 0x671   : > { %v1671_v50 = vsel %vm623_vm1, %v1670_v49, 0.0 }
 0x672   : > { %1672 = vadd.xlane.f32.xlu1 %v1671_v50 }
 0x6fb   : > { %v1673_v54 = vpop.xlane.xlu1 %1672 }
 0x6fc   : > { %v1674_v55 = vmul.f32 0.03125, %v1673_v54 }
 0x6fe   : > { %v1675_v56 = vadd.f32 1e-12, %v1674_v55 }
 0x700   : > { %2369 = vrsqrt.f32 %v1675_v56  ;;  %vm1678_vm6 = vcmp.eq.f32.partialorder %v1675_v56, inf  ;;  %v1681_v59 = vand.u32 2147483648, %v1675_v56  ;;  %vm1680_vm7 = vcmp.eq.f32.partialorder %v1675_v56, 0.0 }
 0x70d   : > { %v2370_v57 = vpop.eup %2369 }
 0x70e   : > { %v1677_v58 = vmul.f32 %v2370_v57, %v1675_v56 }
 0x710   : > { %v1679_v60 = vsel %vm1678_vm6, %v1675_v56, %v1677_v58 }
 0x711   : > { %v1682_v61 = vsel %vm1680_vm7, %v1681_v59, %v1679_v60 }
 0x712   : > { %2371 = vrcp.f32 %v1682_v61 }
 0x71f   : > { %v2372_v62 = vpop.eup %2371 }
 0x720   : > { %v1685_v1 = vmul.f32 %v2372_v62, %v1669_v48  ;;  %v2089_v62 = vld [vmem:[%s3090_s7] ss:$0 sm:$0xff]  ;;  %s2561_s7 = smov [#allocation11]  }
 0x721   : > { %s2465_s19 = sshll.u32 %s2561_s7, 4  ;;  %s2466_s19 = int_to_ptr.vmem [resolvable:$false] %s2465_s19 }
 0x722   : > { %v1692_v3 = vmul.f32 %v2083_v63, %v1685_v1  ;;  %v2090_v1 = vld [vmem:[%s3091_s12] ss:$0 sm:$0xff]  ;;  %s2467_s0 = scalar_lea.vmem %s2466_s19, 256  ;;  %p2468_p2 = scmp.lt.s32.totalorder %s1955_s15, %s2466_s19 }
 0x723   : > { %p2469_p13 = scmp.lt.s32.totalorder %s2467_s0, %s2461_s16 }
 0x724   : > { %v2939_v4 = vadd.f32 %v2084_v2, %v1692_v3 }
 0x725   : > { %p2470_p0 = por %p2469_p13, %p2468_p2 }
 0x726   : > { %2238 = vmatmul.mubr.msk.f32.vlgmr.msra.gmra.mxu1 %vm623_vm1, %v2939_v4 }
 0x727   : > { %p2471_p5 = pnand %p2470_p0, %p2464_p11 }
 0x7e6   : > { %v1780_v15 = vpop.f32.mrf.mxu1 }
 0x7e7   : > { %v1781_v16 = vadd.f32 %v2085_v14, %v1780_v15 }
 0x7e8   : > { %v2239_v17 = vpop.f32.mrf.mxu1 }
 0x7e9   : > { %v1785_v18 = vmul.f32 0.70710677, %v1781_v16  ;;  %v1784_v40 = vmul.f32 0.5, %v1781_v16 }
 0x7eb   : > { %v1788_v19 = vand.u32 2147483647, %v1785_v18  ;;  %vm1786_vm8 = vcmp.ge.f32.partialorder %v1785_v18, 0.0 }
 0x7ec   : > { %v1787_v38 = vsel %vm1786_vm8, 1.0, %v2560_v37 }
 0x7ed   : > { %v1789_v20 = vmul.f32 0.3275911, %v1788_v19  ;;  %v1802_v22 = vsub.f32 0.0, %v1788_v19 }
 0x7ef   : > { %v1790_v21 = vadd.f32 1.0, %v1789_v20  ;;  %v1803_v23 = vmul.f32 %v1802_v22, %v1788_v19 }
 0x7f1   : > { %2373 = vrcp.f32 %v1790_v21  ;;  %v1804_v26 = vmul.f32 1.442695, %v1803_v23 }
 0x7f3   : > { %2375 = vpow2.f32 %v1804_v26 }
 0x7fe   : > { %v2374_v24 = vpop.eup %2373 }
 0x7ff   : > { %v1793_v25 = vmul.f32 1.0614054, %v2374_v24 }
 0x800   : > { %v2376_v34 = vpop.eup %2375 }
 0x801   : > { %v1794_v27 = vadd.f32 -1.4531521, %v1793_v25 }
 0x803   : > { %v1795_v0 = vmul.f32 %v2374_v24, %v1794_v27 }
 0x805   : > { %v1796_v28 = vadd.f32 1.4214138, %v1795_v0 }
 0x807   : > { %v1797_v29 = vmul.f32 %v2374_v24, %v1796_v28 }
 0x809   : > { %v1798_v30 = vadd.f32 -0.28449672, %v1797_v29 }
 0x80b   : > { %v1799_v31 = vmul.f32 %v2374_v24, %v1798_v30 }
 0x80d   : > { %v1800_v32 = vadd.f32 0.2548296, %v1799_v31 }
 0x80f   : > { %v1801_v33 = vmul.f32 %v2374_v24, %v1800_v32 }
 0x811   : > { %v1806_v35 = vmul.f32 %v2376_v34, %v1801_v33 }
 0x813   : > { %v1807_v36 = vsub.f32 1.0, %v1806_v35 }
 0x815   : > { %v1808_v39 = vmul.f32 %v1807_v36, %v1787_v38 }
 0x817   : > { %v1809_v41 = vadd.f32 1.0, %v1808_v39 }
 0x819   : > { %v1810_v42 = vmul.f32 %v1809_v41, %v1784_v40 }
 0x81b   : > { %2257 = vmatmul.mubr.msk.f32.vlgmr.msra.gmra.mxu0 %vm1826_vm9, %v1810_v42 }
 0x8db   : > { %v1896_v44 = vpop.f32.mrf.mxu0 }
 0x8dc   : > { %v1897_v45 = vadd.f32 %v2087_v43, %v1896_v44 }
 0x8dd   : > { %v2258_v46 = vpop.f32.mrf.mxu0 }
 0x8de   : > { %v1900_v47 = vadd.f32 %v1897_v45, %v2939_v4 }
 0x8e0   : > { %v1903_v48 = vsel %vm623_vm1, %v1900_v47, 0.0 }
 0x8e1   : > { %1904 = vadd.xlane.f32.xlu0 %v1903_v48 }
 0x96a   : > { %v1905_v49 = vpop.xlane.xlu0 %1904 }
 0x96b   : > { %v1906_v50 = vmul.f32 0.03125, %v1905_v49 }
 0x96d   : > { %v1907_v51 = vsub.f32 %v1900_v47, %v1906_v50 }
 0x96f   : > { %v1908_v52 = vmul.f32 %v1907_v51, %v1907_v51 }
 0x971   : > { %v1909_v53 = vsel %vm623_vm1, %v1908_v52, 0.0 }
 0x972   : > { %1910 = vadd.xlane.f32.xlu0 %v1909_v53 }
 0x9fb   : > { %v1911_v8 = vpop.xlane.xlu0 %1910 }
 0x9fc   : > { %v1912_v54 = vmul.f32 0.03125, %v1911_v8 }
 0x9fe   : > { %v1913_v55 = vadd.f32 1e-12, %v1912_v54 }
 0xa00   : > { %2377 = vrsqrt.f32 %v1913_v55  ;;  %vm1916_vm10 = vcmp.eq.f32.partialorder %v1913_v55, inf  ;;  %v1919_v58 = vand.u32 2147483648, %v1913_v55  ;;  %vm1918_vm11 = vcmp.eq.f32.partialorder %v1913_v55, 0.0 }
 0xa0d   : > { %v2378_v56 = vpop.eup %2377 }
 0xa0e   : > { %v1915_v57 = vmul.f32 %v2378_v56, %v1913_v55 }
 0xa10   : > { %v1917_v59 = vsel %vm1916_vm10, %v1913_v55, %v1915_v57 }
 0xa11   : > { %v1920_v60 = vsel %vm1918_vm11, %v1919_v58, %v1917_v59 }
 0xa12   : > { %2379 = vrcp.f32 %v1920_v60 }
 0xa1f   : > { %v2380_v61 = vpop.eup %2379 }
 0xa20   : > { %v1923_v63 = vmul.f32 %v2380_v61, %v1907_v51 }
 0xa22   : > { %v1930_v2 = vmul.f32 %v2089_v62, %v1923_v63 }
 0xa24   : > { %v1937_v3 = vadd.f32 %v2090_v1, %v1930_v2 }
 0xa26   : > { %1938 = vst.msk [vmem:[%s606_s28] sm:$0xff] %vm623_vm1, %v1937_v3 }
 0xa27   : > { %2474 = shalt.err (!%p2471_p5)
}
 0xa28   : > { %s2475_s17 = scalar_lea.hbm %s1952_s24, 128  ;;  %s2479_s12 = scalar_lea.hbm %s3092_s30, 256 }
 0xa29   : > { %p2476_p10 = scmp.ne.s32.totalorder %s1952_s24, %s2475_s17  ;;  %p2480_p6 = scmp.lt.s32.totalorder %s1952_s24, %s3092_s30 }
 0xa2a   : > { %p2481_p12 = scmp.lt.s32.totalorder %s2479_s12, %s2475_s17 }
 0xa2b   : > { %p2477_p1 = pnand %p2476_p10, %p2747_p7 }
 0xa2c   : > { %p2482_p3 = por %p2481_p12, %p2480_p6 }
 0xa2d   : > { %p2478_p4 = pneg %p2477_p1 }
 0xa2f   : > { %p2483_p8 = pnand %p2482_p3, %p2478_p4 }
 0xa31   : > { %2486 = shalt.err (!%p2483_p8)
}
 0xa32   : > { %2269 = dma.vmem_to_hbm [thread:$0]  (%p2747_p7), %s1955_s15, 128, %s1952_s24, %s1940_s23  }
 0xa33 PF: > { %s3093_s18 = sld [smem:[#allocation15_spill]]  ;;  %p3096_p11 = scmp.ge.s32.totalorder %s2545_s29, 2 }
 0xa34   : > { %s3094_s20 = sld [smem:[#allocation18_spill]] }
 0xa39   : > { %s1966_s16 = sand.u32 1, %s3093_s18  }
 0xa3a   : > { %p3095_p9 = scmp.ne.s32.totalorder %s3094_s20, 0  ;;  %s1967_s7 = scalar_lea.sflag [#allocation7], %s1966_s16 }
 0xa3c   : > { %p2283_p2 = pnand %p3096_p11, %p3095_p9 }
 0xa3e   : > { %p2284_p13 = pneg %p2283_p2 }
 0xa40   : > { %2520 = dma.done.wait (%p2284_p13), %s1967_s7, 128  }
 0xa41   : > { %2522 = vsyncadd (%p2284_p13), %s1967_s7, 4294967168  ;;  %s34_s29 = sadd.s32 1, %s2545_s29   ;;  %s3097_s27 = sld [smem:[#allocation17_spill]] }
 0xa42   : > { %p31_p0 = scmp.ge.s32.totalorder %s34_s29, 4   ;;  %s3098_s28 = sld [smem:[#allocation19_spill]] }
 0xa43   : > { %s3099_s24 = smov %s2529_s25  ;;  %s3100_s25 = smov %s2533_s26 }
 0xa44   : > { %s3101_s26 = smov %s2756_s22  ;;  %33 = sbr.rel (!%p31_p0) target bundleno = 17 (0x11), region = 146 }
 0xa49   :  { %1972 = vsyncpa [#allocation6], 1 }
 0xa4a   :  { %1974 = vsyncpa [#allocation6 + $0x1], 1 }
 0xa4b   :  { %1975 = vsyncpa [#allocation9], 1 }
 0xa4c   :  { %1976 = vsyncpa [#allocation7], 1 }
 0xa4d   :  { %1978 = vsyncpa [#allocation7 + $0x1], 1 }

</bundles_post_ra>
